<compile_context>
chip_gen: v5e
topology: v5e:2x2
jax: 0.10.0
libtpu: 0.0.40
codegen_flags: <defaults>
</compile_context>

<pallas_src>
import functools

import jax
import jax.numpy as jnp
from jax.experimental import pallas as pl
from jax.experimental.pallas import tpu as pltpu

LANE = 128
SUBLANE = 8  # f32 sublane minimum


def _round_up(x, m):
    return ((x + m - 1) // m) * m


def _pad_to(x, shape):
    return jnp.pad(x, [(0, s - d) for d, s in zip(x.shape, shape)])


# --------------------------- fused forward kernel ----------------------------
def _fused_forward_kernel(onehot_ref, m_ref, bias_ref, whh_ref, fcw_ref,
                          fcb_ref, wrel_ref, adjcat_ref, out_ref,
                          *, seq_len, n_pad, relu_flags):
    f32, bf16 = jnp.float32, jnp.bfloat16
    HP = whh_ref.shape[0]                     # 128 (lane-dense hidden)
    NP, DP = out_ref.shape                    # (8, 128)
    L, R = wrel_ref.shape[0], wrel_ref.shape[1]

    # ---- LSTM input projection for all timesteps at once --------------------
    # Embedding is already folded into m_ref (= emb @ W_ih) in the wrapper.
    gx_all = (jnp.dot(onehot_ref[...], m_ref[...], preferred_element_type=f32)
              + bias_ref[...])                # (T*NP, 4*HP) f32

    # ---- LSTM recurrence (PyTorch gate order i, f, g, o), unrolled over T ---
    # NOTE: padded gate columns rely on the padded bias / weight columns being
    # exactly zero (g_pad = tanh(0) = 0 keeps c/h padding at 0).
    whh = whh_ref[...]                        # (HP, 4*HP) bf16
    h = jnp.zeros((n_pad, HP), f32)
    c = jnp.zeros((n_pad, HP), f32)
    for t in range(seq_len):
        gates = gx_all[t * n_pad:(t + 1) * n_pad, :] + jnp.dot(
            h.astype(bf16), whh, preferred_element_type=f32)      # (NP, 4*HP)
        i = jax.nn.sigmoid(gates[:, 0 * HP:1 * HP])
        f = jax.nn.sigmoid(gates[:, 1 * HP:2 * HP])
        g = jnp.tanh(gates[:, 2 * HP:3 * HP])
        o = jax.nn.sigmoid(gates[:, 3 * HP:4 * HP])
        c = f * c + i * g
        h = o * jnp.tanh(c)

    # ---- fc projection: one node feature row per batch sequence -------------
    hn = (jnp.dot(h.astype(bf16), fcw_ref[...], preferred_element_type=f32)
          + fcb_ref[...])                     # (NP, DP) f32

    # ---- R-GCN layers: relations folded into one wide contraction -----------
    adj_cat = adjcat_ref[...]                 # (NP, R*NP) bf16
    for l in range(L):
        msgs = [jnp.dot(hn.astype(bf16), wrel_ref[l, r],
                        preferred_element_type=f32).astype(bf16)
                for r in range(R)]
        m_cat = jnp.concatenate(msgs, axis=0)                     # (R*NP, DP)
        acc = jnp.dot(adj_cat, m_cat, preferred_element_type=f32) # (NP, DP)
        hn = jnp.maximum(acc, 0.0) if relu_flags[l] else acc

    out_ref[...] = hn


# ------------------------------- model forward --------------------------------
def model_forward(params, adj, inputs, sequence_length):
    del sequence_length                 # reference model never packs the sequence
    B, T = inputs.shape
    V, H = params["embedding"].shape
    R, N, _ = adj.shape
    layers = params["rgcn_layers"]
    L = len(layers)
    assert B == N, "reference assigns one RNN feature row per graph node"

    HP = _round_up(H, LANE)             # 128 (lane-dense hidden / gate blocks)
    VP = _round_up(V, LANE)             # 128
    DP = LANE                           # all RGCN feature dims padded to 128
    NP = _round_up(N, SUBLANE)          # node/batch dim padded to sublane (8)

    # --- token ids: time-major, time-reversed (h_n[-1] == reverse-dir final h),
    #     batch padded to NP, encoded as a lane-dense one-hot in the wrapper ----
    ids = jnp.flip(inputs.T.astype(jnp.int32), axis=0)            # (T, B)
    ids = jnp.pad(ids, ((0, 0), (0, NP - B))).reshape(T * NP)
    onehot = (ids[:, None] == jnp.arange(VP, dtype=jnp.int32)[None, :]
              ).astype(jnp.bfloat16)                              # (T*NP, VP)

    # --- pad / transpose weights (layout plumbing, outside the kernel) ----------
    emb_p = _pad_to(params["embedding"].astype(jnp.float32), (VP, HP))
    wih, whh = params["w_ih_rev"], params["w_hh_rev"]
    bias = params["b_ih_rev"] + params["b_hh_rev"]
    wih_p = jnp.zeros((HP, 4 * HP), jnp.float32)
    whh_p = jnp.zeros((HP, 4 * HP), jnp.float32)
    b_p = jnp.zeros((1, 4 * HP), jnp.float32)
    for k in range(4):                  # per-gate 128-lane blocks (lane-dense)
        wih_p = wih_p.at[:H, k * HP:k * HP + H].set(wih[k * H:(k + 1) * H, :].T)
        whh_p = whh_p.at[:H, k * HP:k * HP + H].set(whh[k * H:(k + 1) * H, :].T)
        b_p = b_p.at[0, k * HP:k * HP + H].set(bias[k * H:(k + 1) * H])

    # Fold embedding table into the input projection: M = emb @ W_ih.
    m_p = jnp.dot(emb_p, wih_p).astype(jnp.bfloat16)              # (VP, 4*HP)
    whh_b = whh_p.astype(jnp.bfloat16)

    fcw_p = _pad_to(params["fc_w"].T.astype(jnp.float32), (HP, DP)
                    ).astype(jnp.bfloat16)
    fcb_p = _pad_to(params["fc_b"][None, :].astype(jnp.float32), (1, DP))

    # --- compose W_r = sum_b w_comp[r,b] * bases[b], pad, stack over layers -----
    w_all = jnp.zeros((L, R, DP, DP), jnp.float32)
    relu_flags = []
    for li, (bases, w_comp, relu_flag) in enumerate(layers):
        w_full = jnp.einsum("rb,bde->rde", w_comp, bases)         # (R, din, dout)
        assert w_full.shape[1] <= DP and w_full.shape[2] <= DP
        w_all = w_all.at[li, :, :w_full.shape[1], :w_full.shape[2]].set(w_full)
        relu_flags.append(bool(relu_flag))
    w_all = w_all.astype(jnp.bfloat16)

    # --- concatenated adjacency: A_cat[i, r*NP + j] = A[r, i, j] ---------------
    adj_p = _pad_to(adj.astype(jnp.float32), (R, NP, NP))
    adj_cat = jnp.transpose(adj_p, (1, 0, 2)).reshape(NP, R * NP
                                                      ).astype(jnp.bfloat16)

    kernel = functools.partial(_fused_forward_kernel, seq_len=T, n_pad=NP,
                               relu_flags=tuple(relu_flags))
    vspec = pl.BlockSpec(memory_space=pltpu.MemorySpace.VMEM)
    out_p = pl.pallas_call(
        kernel,
        out_shape=jax.ShapeDtypeStruct((NP, DP), jnp.float32),
        in_specs=[vspec] * 8,
        out_specs=vspec,
    )(onehot, m_p, b_p, whh_b, fcw_p, fcb_p, w_all, adj_cat)

    num_classes = layers[-1][0].shape[2]
    return out_p[:N, :num_classes]


# ------------------------------- parameter init --------------------------------
def init_params(key, *, rnn_input_size, rnn_hidden, rgcn_input, rgcn_hidden,
                num_classes, num_rels, num_bases, num_hidden_layers):
    keys = iter(jax.random.split(key, 64))
    p = {}
    p["embedding"] = jax.random.normal(next(keys), (rnn_input_size, rnn_hidden),
                                       jnp.float32)
    k = 1.0 / (rnn_hidden ** 0.5)
    p["w_ih_rev"] = jax.random.uniform(next(keys), (4 * rnn_hidden, rnn_hidden),
                                       jnp.float32, -k, k)
    p["w_hh_rev"] = jax.random.uniform(next(keys), (4 * rnn_hidden, rnn_hidden),
                                       jnp.float32, -k, k)
    p["b_ih_rev"] = jax.random.uniform(next(keys), (4 * rnn_hidden,), jnp.float32, -k, k)
    p["b_hh_rev"] = jax.random.uniform(next(keys), (4 * rnn_hidden,), jnp.float32, -k, k)
    p["fc_w"] = jax.random.uniform(next(keys), (rgcn_input, rnn_hidden),
                                   jnp.float32, -k, k)
    p["fc_b"] = jax.random.uniform(next(keys), (rgcn_input,), jnp.float32, -k, k)

    nb = num_bases if (0 < num_bases <= num_rels) else num_rels
    layer_dims = [(rgcn_input, rgcn_hidden, True)]
    layer_dims += [(rgcn_hidden, rgcn_hidden, True)] * num_hidden_layers
    layer_dims += [(rgcn_hidden, num_classes, False)]
    layers = []
    for (din, dout, relu_flag) in layer_dims:
        bases = jax.random.normal(next(keys), (nb, din, dout), jnp.float32) / (din ** 0.5)
        if nb < num_rels:
            w_comp = jax.random.normal(next(keys), (num_rels, nb), jnp.float32)
        else:
            w_comp = jnp.eye(num_rels, dtype=jnp.float32)
        layers.append((bases, w_comp, relu_flag))
    p["rgcn_layers"] = layers
    return p


# ------------------------------------ main --------------------------------------
if __name__ == "__main__":
    RNN_input_size = 16      # vocab size
    RNN_hidden_size = 32
    RGCN_input_size = 16
    RGCN_hidden_size = 32
    Num_classes = 8
    Num_rels = 3
    Num_bases = 2
    Num_hidden_layers = 1
    batch = num_nodes = 8    # one graph node per sequence in the batch
    seq_len = 8

    key = jax.random.PRNGKey(0)
    k_inp, k_adj, k_param = jax.random.split(key, 3)

    inputs = jax.random.randint(k_inp, (batch, seq_len), 0, RNN_input_size, jnp.int32)
    sequence_length = jnp.full((batch,), seq_len, dtype=jnp.int32)

    # Deterministic synthetic multi-relational graph: dense adjacency per relation
    # with destination in-degree normalization folded in (A[r, dst, src]).
    adj_raw = (jax.random.uniform(k_adj, (Num_rels, num_nodes, num_nodes)) < 0.5
               ).astype(jnp.float32)
    deg = jnp.maximum(adj_raw.sum(axis=(0, 2)), 1.0)
    adj = adj_raw / deg[None, :, None]

    params = init_params(
        k_param,
        rnn_input_size=RNN_input_size, rnn_hidden=RNN_hidden_size,
        rgcn_input=RGCN_input_size, rgcn_hidden=RGCN_hidden_size,
        num_classes=Num_classes, num_rels=Num_rels, num_bases=Num_bases,
        num_hidden_layers=Num_hidden_layers)

    out = model_forward(params, adj, inputs, sequence_length)
    out = jax.block_until_ready(out)
    assert out.shape == (num_nodes, Num_classes), out.shape
    assert jnp.all(jnp.isfinite(out))
    print("KERNEL_OK")
</pallas_src>

<mosaic_0001>
module attributes {stable_mosaic.version = 11 : i64} {
  func.func @_fused_forward_kernel(%arg0: memref<64x128xbf16, #tpu.memory_space<vmem>>, %arg1: memref<128x512xbf16, #tpu.memory_space<vmem>>, %arg2: memref<1x512xf32, #tpu.memory_space<vmem>>, %arg3: memref<128x512xbf16, #tpu.memory_space<vmem>>, %arg4: memref<128x128xbf16, #tpu.memory_space<vmem>>, %arg5: memref<1x128xf32, #tpu.memory_space<vmem>>, %arg6: memref<3x3x128x128xbf16, #tpu.memory_space<vmem>>, %arg7: memref<8x24xbf16, #tpu.memory_space<vmem>>, %arg8: memref<8x128xf32, #tpu.memory_space<vmem>>) attributes {dimension_semantics = [], scalar_prefetch = 0 : i64, scratch_operands = 0 : i64, tpu.core_type = #tpu.core_type<tc>} {
    %c0 = arith.constant 0 : index
    %c0_0 = arith.constant 0 : index
    %0 = vector.load %arg0[%c0, %c0_0] : memref<64x128xbf16, #tpu.memory_space<vmem>>, vector<64x128xbf16>
    %c0_1 = arith.constant 0 : index
    %c0_2 = arith.constant 0 : index
    %1 = vector.load %arg1[%c0_1, %c0_2] : memref<128x512xbf16, #tpu.memory_space<vmem>>, vector<128x512xbf16>
    %cst = arith.constant dense<0.000000e+00> : vector<64x512xf32>
    %2 = tpu.matmul %0, %1, %cst {dimension_numbers = #tpu.dot_dimension_numbers<[1], [0], [0], [1], [0, 0, 1, 1], [], []>} : vector<64x128xbf16>, vector<128x512xbf16>, vector<64x512xf32> -> vector<64x512xf32>
    %c0_3 = arith.constant 0 : index
    %c0_4 = arith.constant 0 : index
    %3 = vector.load %arg2[%c0_3, %c0_4] : memref<1x512xf32, #tpu.memory_space<vmem>>, vector<1x512xf32>
    %4 = vector.broadcast %3 : vector<1x512xf32> to vector<64x512xf32>
    %5 = arith.addf %2, %4 : vector<64x512xf32>
    %c0_5 = arith.constant 0 : index
    %c0_6 = arith.constant 0 : index
    %6 = vector.load %arg3[%c0_5, %c0_6] : memref<128x512xbf16, #tpu.memory_space<vmem>>, vector<128x512xbf16>
    %cst_7 = arith.constant 0.000000e+00 : f32
    %7 = vector.broadcast %cst_7 : f32 to vector<8x128xf32>
    %cst_8 = arith.constant 0.000000e+00 : f32
    %8 = vector.broadcast %cst_8 : f32 to vector<8x128xf32>
    %9 = vector.extract_strided_slice %5 {offsets = [0, 0], sizes = [8, 512], strides = [1, 1]} : vector<64x512xf32> to vector<8x512xf32>
    %10 = arith.truncf %7 : vector<8x128xf32> to vector<8x128xbf16>
    %cst_9 = arith.constant dense<0.000000e+00> : vector<8x512xf32>
    %11 = tpu.matmul %10, %6, %cst_9 {dimension_numbers = #tpu.dot_dimension_numbers<[1], [0], [0], [1], [0, 0, 1, 1], [], []>} : vector<8x128xbf16>, vector<128x512xbf16>, vector<8x512xf32> -> vector<8x512xf32>
    %12 = arith.addf %9, %11 : vector<8x512xf32>
    %13 = vector.extract_strided_slice %12 {offsets = [0, 0], sizes = [8, 128], strides = [1, 1]} : vector<8x512xf32> to vector<8x128xf32>
    %14 = arith.negf %13 : vector<8x128xf32>
    %15 = math.exp %14 : vector<8x128xf32>
    %cst_10 = arith.constant 1.000000e+00 : f32
    %16 = vector.broadcast %cst_10 : f32 to vector<8x128xf32>
    %17 = arith.addf %16, %15 : vector<8x128xf32>
    %18 = arith.divf %16, %17 : vector<8x128xf32>
    %19 = vector.extract_strided_slice %12 {offsets = [0, 128], sizes = [8, 128], strides = [1, 1]} : vector<8x512xf32> to vector<8x128xf32>
    %20 = arith.negf %19 : vector<8x128xf32>
    %21 = math.exp %20 : vector<8x128xf32>
    %cst_11 = arith.constant 1.000000e+00 : f32
    %22 = vector.broadcast %cst_11 : f32 to vector<8x128xf32>
    %23 = arith.addf %22, %21 : vector<8x128xf32>
    %24 = arith.divf %22, %23 : vector<8x128xf32>
    %25 = vector.extract_strided_slice %12 {offsets = [0, 256], sizes = [8, 128], strides = [1, 1]} : vector<8x512xf32> to vector<8x128xf32>
    %26 = math.tanh %25 : vector<8x128xf32>
    %27 = vector.extract_strided_slice %12 {offsets = [0, 384], sizes = [8, 128], strides = [1, 1]} : vector<8x512xf32> to vector<8x128xf32>
    %28 = arith.negf %27 : vector<8x128xf32>
    %29 = math.exp %28 : vector<8x128xf32>
    %cst_12 = arith.constant 1.000000e+00 : f32
    %30 = vector.broadcast %cst_12 : f32 to vector<8x128xf32>
    %31 = arith.addf %30, %29 : vector<8x128xf32>
    %32 = arith.divf %30, %31 : vector<8x128xf32>
    %33 = arith.mulf %24, %8 : vector<8x128xf32>
    %34 = arith.mulf %18, %26 : vector<8x128xf32>
    %35 = arith.addf %33, %34 : vector<8x128xf32>
    %36 = math.tanh %35 : vector<8x128xf32>
    %37 = arith.mulf %32, %36 : vector<8x128xf32>
    %38 = vector.extract_strided_slice %5 {offsets = [8, 0], sizes = [8, 512], strides = [1, 1]} : vector<64x512xf32> to vector<8x512xf32>
    %39 = arith.truncf %37 : vector<8x128xf32> to vector<8x128xbf16>
    %cst_13 = arith.constant dense<0.000000e+00> : vector<8x512xf32>
    %40 = tpu.matmul %39, %6, %cst_13 {dimension_numbers = #tpu.dot_dimension_numbers<[1], [0], [0], [1], [0, 0, 1, 1], [], []>} : vector<8x128xbf16>, vector<128x512xbf16>, vector<8x512xf32> -> vector<8x512xf32>
    %41 = arith.addf %38, %40 : vector<8x512xf32>
    %42 = vector.extract_strided_slice %41 {offsets = [0, 0], sizes = [8, 128], strides = [1, 1]} : vector<8x512xf32> to vector<8x128xf32>
    %43 = arith.negf %42 : vector<8x128xf32>
    %44 = math.exp %43 : vector<8x128xf32>
    %cst_14 = arith.constant 1.000000e+00 : f32
    %45 = vector.broadcast %cst_14 : f32 to vector<8x128xf32>
    %46 = arith.addf %45, %44 : vector<8x128xf32>
    %47 = arith.divf %45, %46 : vector<8x128xf32>
    %48 = vector.extract_strided_slice %41 {offsets = [0, 128], sizes = [8, 128], strides = [1, 1]} : vector<8x512xf32> to vector<8x128xf32>
    %49 = arith.negf %48 : vector<8x128xf32>
    %50 = math.exp %49 : vector<8x128xf32>
    %cst_15 = arith.constant 1.000000e+00 : f32
    %51 = vector.broadcast %cst_15 : f32 to vector<8x128xf32>
    %52 = arith.addf %51, %50 : vector<8x128xf32>
    %53 = arith.divf %51, %52 : vector<8x128xf32>
    %54 = vector.extract_strided_slice %41 {offsets = [0, 256], sizes = [8, 128], strides = [1, 1]} : vector<8x512xf32> to vector<8x128xf32>
    %55 = math.tanh %54 : vector<8x128xf32>
    %56 = vector.extract_strided_slice %41 {offsets = [0, 384], sizes = [8, 128], strides = [1, 1]} : vector<8x512xf32> to vector<8x128xf32>
    %57 = arith.negf %56 : vector<8x128xf32>
    %58 = math.exp %57 : vector<8x128xf32>
    %cst_16 = arith.constant 1.000000e+00 : f32
    %59 = vector.broadcast %cst_16 : f32 to vector<8x128xf32>
    %60 = arith.addf %59, %58 : vector<8x128xf32>
    %61 = arith.divf %59, %60 : vector<8x128xf32>
    %62 = arith.mulf %53, %35 : vector<8x128xf32>
    %63 = arith.mulf %47, %55 : vector<8x128xf32>
    %64 = arith.addf %62, %63 : vector<8x128xf32>
    %65 = math.tanh %64 : vector<8x128xf32>
    %66 = arith.mulf %61, %65 : vector<8x128xf32>
    %67 = vector.extract_strided_slice %5 {offsets = [16, 0], sizes = [8, 512], strides = [1, 1]} : vector<64x512xf32> to vector<8x512xf32>
    %68 = arith.truncf %66 : vector<8x128xf32> to vector<8x128xbf16>
    %cst_17 = arith.constant dense<0.000000e+00> : vector<8x512xf32>
    %69 = tpu.matmul %68, %6, %cst_17 {dimension_numbers = #tpu.dot_dimension_numbers<[1], [0], [0], [1], [0, 0, 1, 1], [], []>} : vector<8x128xbf16>, vector<128x512xbf16>, vector<8x512xf32> -> vector<8x512xf32>
    %70 = arith.addf %67, %69 : vector<8x512xf32>
    %71 = vector.extract_strided_slice %70 {offsets = [0, 0], sizes = [8, 128], strides = [1, 1]} : vector<8x512xf32> to vector<8x128xf32>
    %72 = arith.negf %71 : vector<8x128xf32>
    %73 = math.exp %72 : vector<8x128xf32>
    %cst_18 = arith.constant 1.000000e+00 : f32
    %74 = vector.broadcast %cst_18 : f32 to vector<8x128xf32>
    %75 = arith.addf %74, %73 : vector<8x128xf32>
    %76 = arith.divf %74, %75 : vector<8x128xf32>
    %77 = vector.extract_strided_slice %70 {offsets = [0, 128], sizes = [8, 128], strides = [1, 1]} : vector<8x512xf32> to vector<8x128xf32>
    %78 = arith.negf %77 : vector<8x128xf32>
    %79 = math.exp %78 : vector<8x128xf32>
    %cst_19 = arith.constant 1.000000e+00 : f32
    %80 = vector.broadcast %cst_19 : f32 to vector<8x128xf32>
    %81 = arith.addf %80, %79 : vector<8x128xf32>
    %82 = arith.divf %80, %81 : vector<8x128xf32>
    %83 = vector.extract_strided_slice %70 {offsets = [0, 256], sizes = [8, 128], strides = [1, 1]} : vector<8x512xf32> to vector<8x128xf32>
    %84 = math.tanh %83 : vector<8x128xf32>
    %85 = vector.extract_strided_slice %70 {offsets = [0, 384], sizes = [8, 128], strides = [1, 1]} : vector<8x512xf32> to vector<8x128xf32>
    %86 = arith.negf %85 : vector<8x128xf32>
    %87 = math.exp %86 : vector<8x128xf32>
    %cst_20 = arith.constant 1.000000e+00 : f32
    %88 = vector.broadcast %cst_20 : f32 to vector<8x128xf32>
    %89 = arith.addf %88, %87 : vector<8x128xf32>
    %90 = arith.divf %88, %89 : vector<8x128xf32>
    %91 = arith.mulf %82, %64 : vector<8x128xf32>
    %92 = arith.mulf %76, %84 : vector<8x128xf32>
    %93 = arith.addf %91, %92 : vector<8x128xf32>
    %94 = math.tanh %93 : vector<8x128xf32>
    %95 = arith.mulf %90, %94 : vector<8x128xf32>
    %96 = vector.extract_strided_slice %5 {offsets = [24, 0], sizes = [8, 512], strides = [1, 1]} : vector<64x512xf32> to vector<8x512xf32>
    %97 = arith.truncf %95 : vector<8x128xf32> to vector<8x128xbf16>
    %cst_21 = arith.constant dense<0.000000e+00> : vector<8x512xf32>
    %98 = tpu.matmul %97, %6, %cst_21 {dimension_numbers = #tpu.dot_dimension_numbers<[1], [0], [0], [1], [0, 0, 1, 1], [], []>} : vector<8x128xbf16>, vector<128x512xbf16>, vector<8x512xf32> -> vector<8x512xf32>
    %99 = arith.addf %96, %98 : vector<8x512xf32>
    %100 = vector.extract_strided_slice %99 {offsets = [0, 0], sizes = [8, 128], strides = [1, 1]} : vector<8x512xf32> to vector<8x128xf32>
    %101 = arith.negf %100 : vector<8x128xf32>
    %102 = math.exp %101 : vector<8x128xf32>
    %cst_22 = arith.constant 1.000000e+00 : f32
    %103 = vector.broadcast %cst_22 : f32 to vector<8x128xf32>
    %104 = arith.addf %103, %102 : vector<8x128xf32>
    %105 = arith.divf %103, %104 : vector<8x128xf32>
    %106 = vector.extract_strided_slice %99 {offsets = [0, 128], sizes = [8, 128], strides = [1, 1]} : vector<8x512xf32> to vector<8x128xf32>
    %107 = arith.negf %106 : vector<8x128xf32>
    %108 = math.exp %107 : vector<8x128xf32>
    %cst_23 = arith.constant 1.000000e+00 : f32
    %109 = vector.broadcast %cst_23 : f32 to vector<8x128xf32>
    %110 = arith.addf %109, %108 : vector<8x128xf32>
    %111 = arith.divf %109, %110 : vector<8x128xf32>
    %112 = vector.extract_strided_slice %99 {offsets = [0, 256], sizes = [8, 128], strides = [1, 1]} : vector<8x512xf32> to vector<8x128xf32>
    %113 = math.tanh %112 : vector<8x128xf32>
    %114 = vector.extract_strided_slice %99 {offsets = [0, 384], sizes = [8, 128], strides = [1, 1]} : vector<8x512xf32> to vector<8x128xf32>
    %115 = arith.negf %114 : vector<8x128xf32>
    %116 = math.exp %115 : vector<8x128xf32>
    %cst_24 = arith.constant 1.000000e+00 : f32
    %117 = vector.broadcast %cst_24 : f32 to vector<8x128xf32>
    %118 = arith.addf %117, %116 : vector<8x128xf32>
    %119 = arith.divf %117, %118 : vector<8x128xf32>
    %120 = arith.mulf %111, %93 : vector<8x128xf32>
    %121 = arith.mulf %105, %113 : vector<8x128xf32>
    %122 = arith.addf %120, %121 : vector<8x128xf32>
    %123 = math.tanh %122 : vector<8x128xf32>
    %124 = arith.mulf %119, %123 : vector<8x128xf32>
    %125 = vector.extract_strided_slice %5 {offsets = [32, 0], sizes = [8, 512], strides = [1, 1]} : vector<64x512xf32> to vector<8x512xf32>
    %126 = arith.truncf %124 : vector<8x128xf32> to vector<8x128xbf16>
    %cst_25 = arith.constant dense<0.000000e+00> : vector<8x512xf32>
    %127 = tpu.matmul %126, %6, %cst_25 {dimension_numbers = #tpu.dot_dimension_numbers<[1], [0], [0], [1], [0, 0, 1, 1], [], []>} : vector<8x128xbf16>, vector<128x512xbf16>, vector<8x512xf32> -> vector<8x512xf32>
    %128 = arith.addf %125, %127 : vector<8x512xf32>
    %129 = vector.extract_strided_slice %128 {offsets = [0, 0], sizes = [8, 128], strides = [1, 1]} : vector<8x512xf32> to vector<8x128xf32>
    %130 = arith.negf %129 : vector<8x128xf32>
    %131 = math.exp %130 : vector<8x128xf32>
    %cst_26 = arith.constant 1.000000e+00 : f32
    %132 = vector.broadcast %cst_26 : f32 to vector<8x128xf32>
    %133 = arith.addf %132, %131 : vector<8x128xf32>
    %134 = arith.divf %132, %133 : vector<8x128xf32>
    %135 = vector.extract_strided_slice %128 {offsets = [0, 128], sizes = [8, 128], strides = [1, 1]} : vector<8x512xf32> to vector<8x128xf32>
    %136 = arith.negf %135 : vector<8x128xf32>
    %137 = math.exp %136 : vector<8x128xf32>
    %cst_27 = arith.constant 1.000000e+00 : f32
    %138 = vector.broadcast %cst_27 : f32 to vector<8x128xf32>
    %139 = arith.addf %138, %137 : vector<8x128xf32>
    %140 = arith.divf %138, %139 : vector<8x128xf32>
    %141 = vector.extract_strided_slice %128 {offsets = [0, 256], sizes = [8, 128], strides = [1, 1]} : vector<8x512xf32> to vector<8x128xf32>
    %142 = math.tanh %141 : vector<8x128xf32>
    %143 = vector.extract_strided_slice %128 {offsets = [0, 384], sizes = [8, 128], strides = [1, 1]} : vector<8x512xf32> to vector<8x128xf32>
    %144 = arith.negf %143 : vector<8x128xf32>
    %145 = math.exp %144 : vector<8x128xf32>
    %cst_28 = arith.constant 1.000000e+00 : f32
    %146 = vector.broadcast %cst_28 : f32 to vector<8x128xf32>
    %147 = arith.addf %146, %145 : vector<8x128xf32>
    %148 = arith.divf %146, %147 : vector<8x128xf32>
    %149 = arith.mulf %140, %122 : vector<8x128xf32>
    %150 = arith.mulf %134, %142 : vector<8x128xf32>
    %151 = arith.addf %149, %150 : vector<8x128xf32>
    %152 = math.tanh %151 : vector<8x128xf32>
    %153 = arith.mulf %148, %152 : vector<8x128xf32>
    %154 = vector.extract_strided_slice %5 {offsets = [40, 0], sizes = [8, 512], strides = [1, 1]} : vector<64x512xf32> to vector<8x512xf32>
    %155 = arith.truncf %153 : vector<8x128xf32> to vector<8x128xbf16>
    %cst_29 = arith.constant dense<0.000000e+00> : vector<8x512xf32>
    %156 = tpu.matmul %155, %6, %cst_29 {dimension_numbers = #tpu.dot_dimension_numbers<[1], [0], [0], [1], [0, 0, 1, 1], [], []>} : vector<8x128xbf16>, vector<128x512xbf16>, vector<8x512xf32> -> vector<8x512xf32>
    %157 = arith.addf %154, %156 : vector<8x512xf32>
    %158 = vector.extract_strided_slice %157 {offsets = [0, 0], sizes = [8, 128], strides = [1, 1]} : vector<8x512xf32> to vector<8x128xf32>
    %159 = arith.negf %158 : vector<8x128xf32>
    %160 = math.exp %159 : vector<8x128xf32>
    %cst_30 = arith.constant 1.000000e+00 : f32
    %161 = vector.broadcast %cst_30 : f32 to vector<8x128xf32>
    %162 = arith.addf %161, %160 : vector<8x128xf32>
    %163 = arith.divf %161, %162 : vector<8x128xf32>
    %164 = vector.extract_strided_slice %157 {offsets = [0, 128], sizes = [8, 128], strides = [1, 1]} : vector<8x512xf32> to vector<8x128xf32>
    %165 = arith.negf %164 : vector<8x128xf32>
    %166 = math.exp %165 : vector<8x128xf32>
    %cst_31 = arith.constant 1.000000e+00 : f32
    %167 = vector.broadcast %cst_31 : f32 to vector<8x128xf32>
    %168 = arith.addf %167, %166 : vector<8x128xf32>
    %169 = arith.divf %167, %168 : vector<8x128xf32>
    %170 = vector.extract_strided_slice %157 {offsets = [0, 256], sizes = [8, 128], strides = [1, 1]} : vector<8x512xf32> to vector<8x128xf32>
    %171 = math.tanh %170 : vector<8x128xf32>
    %172 = vector.extract_strided_slice %157 {offsets = [0, 384], sizes = [8, 128], strides = [1, 1]} : vector<8x512xf32> to vector<8x128xf32>
    %173 = arith.negf %172 : vector<8x128xf32>
    %174 = math.exp %173 : vector<8x128xf32>
    %cst_32 = arith.constant 1.000000e+00 : f32
    %175 = vector.broadcast %cst_32 : f32 to vector<8x128xf32>
    %176 = arith.addf %175, %174 : vector<8x128xf32>
    %177 = arith.divf %175, %176 : vector<8x128xf32>
    %178 = arith.mulf %169, %151 : vector<8x128xf32>
    %179 = arith.mulf %163, %171 : vector<8x128xf32>
    %180 = arith.addf %178, %179 : vector<8x128xf32>
    %181 = math.tanh %180 : vector<8x128xf32>
    %182 = arith.mulf %177, %181 : vector<8x128xf32>
    %183 = vector.extract_strided_slice %5 {offsets = [48, 0], sizes = [8, 512], strides = [1, 1]} : vector<64x512xf32> to vector<8x512xf32>
    %184 = arith.truncf %182 : vector<8x128xf32> to vector<8x128xbf16>
    %cst_33 = arith.constant dense<0.000000e+00> : vector<8x512xf32>
    %185 = tpu.matmul %184, %6, %cst_33 {dimension_numbers = #tpu.dot_dimension_numbers<[1], [0], [0], [1], [0, 0, 1, 1], [], []>} : vector<8x128xbf16>, vector<128x512xbf16>, vector<8x512xf32> -> vector<8x512xf32>
    %186 = arith.addf %183, %185 : vector<8x512xf32>
    %187 = vector.extract_strided_slice %186 {offsets = [0, 0], sizes = [8, 128], strides = [1, 1]} : vector<8x512xf32> to vector<8x128xf32>
    %188 = arith.negf %187 : vector<8x128xf32>
    %189 = math.exp %188 : vector<8x128xf32>
    %cst_34 = arith.constant 1.000000e+00 : f32
    %190 = vector.broadcast %cst_34 : f32 to vector<8x128xf32>
    %191 = arith.addf %190, %189 : vector<8x128xf32>
    %192 = arith.divf %190, %191 : vector<8x128xf32>
    %193 = vector.extract_strided_slice %186 {offsets = [0, 128], sizes = [8, 128], strides = [1, 1]} : vector<8x512xf32> to vector<8x128xf32>
    %194 = arith.negf %193 : vector<8x128xf32>
    %195 = math.exp %194 : vector<8x128xf32>
    %cst_35 = arith.constant 1.000000e+00 : f32
    %196 = vector.broadcast %cst_35 : f32 to vector<8x128xf32>
    %197 = arith.addf %196, %195 : vector<8x128xf32>
    %198 = arith.divf %196, %197 : vector<8x128xf32>
    %199 = vector.extract_strided_slice %186 {offsets = [0, 256], sizes = [8, 128], strides = [1, 1]} : vector<8x512xf32> to vector<8x128xf32>
    %200 = math.tanh %199 : vector<8x128xf32>
    %201 = vector.extract_strided_slice %186 {offsets = [0, 384], sizes = [8, 128], strides = [1, 1]} : vector<8x512xf32> to vector<8x128xf32>
    %202 = arith.negf %201 : vector<8x128xf32>
    %203 = math.exp %202 : vector<8x128xf32>
    %cst_36 = arith.constant 1.000000e+00 : f32
    %204 = vector.broadcast %cst_36 : f32 to vector<8x128xf32>
    %205 = arith.addf %204, %203 : vector<8x128xf32>
    %206 = arith.divf %204, %205 : vector<8x128xf32>
    %207 = arith.mulf %198, %180 : vector<8x128xf32>
    %208 = arith.mulf %192, %200 : vector<8x128xf32>
    %209 = arith.addf %207, %208 : vector<8x128xf32>
    %210 = math.tanh %209 : vector<8x128xf32>
    %211 = arith.mulf %206, %210 : vector<8x128xf32>
    %212 = vector.extract_strided_slice %5 {offsets = [56, 0], sizes = [8, 512], strides = [1, 1]} : vector<64x512xf32> to vector<8x512xf32>
    %213 = arith.truncf %211 : vector<8x128xf32> to vector<8x128xbf16>
    %cst_37 = arith.constant dense<0.000000e+00> : vector<8x512xf32>
    %214 = tpu.matmul %213, %6, %cst_37 {dimension_numbers = #tpu.dot_dimension_numbers<[1], [0], [0], [1], [0, 0, 1, 1], [], []>} : vector<8x128xbf16>, vector<128x512xbf16>, vector<8x512xf32> -> vector<8x512xf32>
    %215 = arith.addf %212, %214 : vector<8x512xf32>
    %216 = vector.extract_strided_slice %215 {offsets = [0, 0], sizes = [8, 128], strides = [1, 1]} : vector<8x512xf32> to vector<8x128xf32>
    %217 = arith.negf %216 : vector<8x128xf32>
    %218 = math.exp %217 : vector<8x128xf32>
    %cst_38 = arith.constant 1.000000e+00 : f32
    %219 = vector.broadcast %cst_38 : f32 to vector<8x128xf32>
    %220 = arith.addf %219, %218 : vector<8x128xf32>
    %221 = arith.divf %219, %220 : vector<8x128xf32>
    %222 = vector.extract_strided_slice %215 {offsets = [0, 128], sizes = [8, 128], strides = [1, 1]} : vector<8x512xf32> to vector<8x128xf32>
    %223 = arith.negf %222 : vector<8x128xf32>
    %224 = math.exp %223 : vector<8x128xf32>
    %cst_39 = arith.constant 1.000000e+00 : f32
    %225 = vector.broadcast %cst_39 : f32 to vector<8x128xf32>
    %226 = arith.addf %225, %224 : vector<8x128xf32>
    %227 = arith.divf %225, %226 : vector<8x128xf32>
    %228 = vector.extract_strided_slice %215 {offsets = [0, 256], sizes = [8, 128], strides = [1, 1]} : vector<8x512xf32> to vector<8x128xf32>
    %229 = math.tanh %228 : vector<8x128xf32>
    %230 = vector.extract_strided_slice %215 {offsets = [0, 384], sizes = [8, 128], strides = [1, 1]} : vector<8x512xf32> to vector<8x128xf32>
    %231 = arith.negf %230 : vector<8x128xf32>
    %232 = math.exp %231 : vector<8x128xf32>
    %cst_40 = arith.constant 1.000000e+00 : f32
    %233 = vector.broadcast %cst_40 : f32 to vector<8x128xf32>
    %234 = arith.addf %233, %232 : vector<8x128xf32>
    %235 = arith.divf %233, %234 : vector<8x128xf32>
    %236 = arith.mulf %227, %209 : vector<8x128xf32>
    %237 = arith.mulf %221, %229 : vector<8x128xf32>
    %238 = arith.addf %236, %237 : vector<8x128xf32>
    %239 = math.tanh %238 : vector<8x128xf32>
    %240 = arith.mulf %235, %239 : vector<8x128xf32>
    %241 = arith.truncf %240 : vector<8x128xf32> to vector<8x128xbf16>
    %c0_41 = arith.constant 0 : index
    %c0_42 = arith.constant 0 : index
    %242 = vector.load %arg4[%c0_41, %c0_42] : memref<128x128xbf16, #tpu.memory_space<vmem>>, vector<128x128xbf16>
    %cst_43 = arith.constant dense<0.000000e+00> : vector<8x128xf32>
    %243 = tpu.matmul %241, %242, %cst_43 {dimension_numbers = #tpu.dot_dimension_numbers<[1], [0], [0], [1], [0, 0, 1, 1], [], []>} : vector<8x128xbf16>, vector<128x128xbf16>, vector<8x128xf32> -> vector<8x128xf32>
    %c0_44 = arith.constant 0 : index
    %c0_45 = arith.constant 0 : index
    %244 = vector.load %arg5[%c0_44, %c0_45] : memref<1x128xf32, #tpu.memory_space<vmem>>, vector<1x128xf32>
    %245 = vector.broadcast %244 : vector<1x128xf32> to vector<8x128xf32>
    %246 = arith.addf %243, %245 : vector<8x128xf32>
    %c0_46 = arith.constant 0 : index
    %c0_47 = arith.constant 0 : index
    %247 = vector.load %arg7[%c0_46, %c0_47] : memref<8x24xbf16, #tpu.memory_space<vmem>>, vector<8x24xbf16>
    %248 = arith.truncf %246 : vector<8x128xf32> to vector<8x128xbf16>
    %c0_48 = arith.constant 0 : index
    %c0_49 = arith.constant 0 : index
    %c0_50 = arith.constant 0 : index
    %c0_51 = arith.constant 0 : index
    %249 = vector.load %arg6[%c0_48, %c0_49, %c0_50, %c0_51] : memref<3x3x128x128xbf16, #tpu.memory_space<vmem>>, vector<1x1x128x128xbf16>
    %250 = vector.shape_cast %249 : vector<1x1x128x128xbf16> to vector<128x128xbf16>
    %cst_52 = arith.constant dense<0.000000e+00> : vector<8x128xf32>
    %251 = tpu.matmul %248, %250, %cst_52 {dimension_numbers = #tpu.dot_dimension_numbers<[1], [0], [0], [1], [0, 0, 1, 1], [], []>} : vector<8x128xbf16>, vector<128x128xbf16>, vector<8x128xf32> -> vector<8x128xf32>
    %252 = arith.truncf %251 : vector<8x128xf32> to vector<8x128xbf16>
    %253 = arith.truncf %246 : vector<8x128xf32> to vector<8x128xbf16>
    %c0_53 = arith.constant 0 : index
    %c1 = arith.constant 1 : index
    %c0_54 = arith.constant 0 : index
    %c0_55 = arith.constant 0 : index
    %254 = vector.load %arg6[%c0_53, %c1, %c0_54, %c0_55] : memref<3x3x128x128xbf16, #tpu.memory_space<vmem>>, vector<1x1x128x128xbf16>
    %255 = vector.shape_cast %254 : vector<1x1x128x128xbf16> to vector<128x128xbf16>
    %cst_56 = arith.constant dense<0.000000e+00> : vector<8x128xf32>
    %256 = tpu.matmul %253, %255, %cst_56 {dimension_numbers = #tpu.dot_dimension_numbers<[1], [0], [0], [1], [0, 0, 1, 1], [], []>} : vector<8x128xbf16>, vector<128x128xbf16>, vector<8x128xf32> -> vector<8x128xf32>
    %257 = arith.truncf %256 : vector<8x128xf32> to vector<8x128xbf16>
    %258 = arith.truncf %246 : vector<8x128xf32> to vector<8x128xbf16>
    %c0_57 = arith.constant 0 : index
    %c2 = arith.constant 2 : index
    %c0_58 = arith.constant 0 : index
    %c0_59 = arith.constant 0 : index
    %259 = vector.load %arg6[%c0_57, %c2, %c0_58, %c0_59] : memref<3x3x128x128xbf16, #tpu.memory_space<vmem>>, vector<1x1x128x128xbf16>
    %260 = vector.shape_cast %259 : vector<1x1x128x128xbf16> to vector<128x128xbf16>
    %cst_60 = arith.constant dense<0.000000e+00> : vector<8x128xf32>
    %261 = tpu.matmul %258, %260, %cst_60 {dimension_numbers = #tpu.dot_dimension_numbers<[1], [0], [0], [1], [0, 0, 1, 1], [], []>} : vector<8x128xbf16>, vector<128x128xbf16>, vector<8x128xf32> -> vector<8x128xf32>
    %262 = arith.truncf %261 : vector<8x128xf32> to vector<8x128xbf16>
    %263 = tpu.concatenate %252, %257, %262 in 0 : vector<8x128xbf16>, vector<8x128xbf16>, vector<8x128xbf16> -> vector<24x128xbf16>
    %cst_61 = arith.constant dense<0.000000e+00> : vector<8x128xf32>
    %264 = tpu.matmul %247, %263, %cst_61 {dimension_numbers = #tpu.dot_dimension_numbers<[1], [0], [0], [1], [0, 0, 1, 1], [], []>} : vector<8x24xbf16>, vector<24x128xbf16>, vector<8x128xf32> -> vector<8x128xf32>
    %cst_62 = arith.constant 0.000000e+00 : f32
    %265 = vector.broadcast %cst_62 : f32 to vector<8x128xf32>
    %266 = arith.maximumf %264, %265 : vector<8x128xf32>
    %267 = arith.truncf %266 : vector<8x128xf32> to vector<8x128xbf16>
    %c1_63 = arith.constant 1 : index
    %c0_64 = arith.constant 0 : index
    %c0_65 = arith.constant 0 : index
    %c0_66 = arith.constant 0 : index
    %268 = vector.load %arg6[%c1_63, %c0_64, %c0_65, %c0_66] : memref<3x3x128x128xbf16, #tpu.memory_space<vmem>>, vector<1x1x128x128xbf16>
    %269 = vector.shape_cast %268 : vector<1x1x128x128xbf16> to vector<128x128xbf16>
    %cst_67 = arith.constant dense<0.000000e+00> : vector<8x128xf32>
    %270 = tpu.matmul %267, %269, %cst_67 {dimension_numbers = #tpu.dot_dimension_numbers<[1], [0], [0], [1], [0, 0, 1, 1], [], []>} : vector<8x128xbf16>, vector<128x128xbf16>, vector<8x128xf32> -> vector<8x128xf32>
    %271 = arith.truncf %270 : vector<8x128xf32> to vector<8x128xbf16>
    %272 = arith.truncf %266 : vector<8x128xf32> to vector<8x128xbf16>
    %c1_68 = arith.constant 1 : index
    %c1_69 = arith.constant 1 : index
    %c0_70 = arith.constant 0 : index
    %c0_71 = arith.constant 0 : index
    %273 = vector.load %arg6[%c1_68, %c1_69, %c0_70, %c0_71] : memref<3x3x128x128xbf16, #tpu.memory_space<vmem>>, vector<1x1x128x128xbf16>
    %274 = vector.shape_cast %273 : vector<1x1x128x128xbf16> to vector<128x128xbf16>
    %cst_72 = arith.constant dense<0.000000e+00> : vector<8x128xf32>
    %275 = tpu.matmul %272, %274, %cst_72 {dimension_numbers = #tpu.dot_dimension_numbers<[1], [0], [0], [1], [0, 0, 1, 1], [], []>} : vector<8x128xbf16>, vector<128x128xbf16>, vector<8x128xf32> -> vector<8x128xf32>
    %276 = arith.truncf %275 : vector<8x128xf32> to vector<8x128xbf16>
    %277 = arith.truncf %266 : vector<8x128xf32> to vector<8x128xbf16>
    %c1_73 = arith.constant 1 : index
    %c2_74 = arith.constant 2 : index
    %c0_75 = arith.constant 0 : index
    %c0_76 = arith.constant 0 : index
    %278 = vector.load %arg6[%c1_73, %c2_74, %c0_75, %c0_76] : memref<3x3x128x128xbf16, #tpu.memory_space<vmem>>, vector<1x1x128x128xbf16>
    %279 = vector.shape_cast %278 : vector<1x1x128x128xbf16> to vector<128x128xbf16>
    %cst_77 = arith.constant dense<0.000000e+00> : vector<8x128xf32>
    %280 = tpu.matmul %277, %279, %cst_77 {dimension_numbers = #tpu.dot_dimension_numbers<[1], [0], [0], [1], [0, 0, 1, 1], [], []>} : vector<8x128xbf16>, vector<128x128xbf16>, vector<8x128xf32> -> vector<8x128xf32>
    %281 = arith.truncf %280 : vector<8x128xf32> to vector<8x128xbf16>
    %282 = tpu.concatenate %271, %276, %281 in 0 : vector<8x128xbf16>, vector<8x128xbf16>, vector<8x128xbf16> -> vector<24x128xbf16>
    %cst_78 = arith.constant dense<0.000000e+00> : vector<8x128xf32>
    %283 = tpu.matmul %247, %282, %cst_78 {dimension_numbers = #tpu.dot_dimension_numbers<[1], [0], [0], [1], [0, 0, 1, 1], [], []>} : vector<8x24xbf16>, vector<24x128xbf16>, vector<8x128xf32> -> vector<8x128xf32>
    %cst_79 = arith.constant 0.000000e+00 : f32
    %284 = vector.broadcast %cst_79 : f32 to vector<8x128xf32>
    %285 = arith.maximumf %283, %284 : vector<8x128xf32>
    %286 = arith.truncf %285 : vector<8x128xf32> to vector<8x128xbf16>
    %c2_80 = arith.constant 2 : index
    %c0_81 = arith.constant 0 : index
    %c0_82 = arith.constant 0 : index
    %c0_83 = arith.constant 0 : index
    %287 = vector.load %arg6[%c2_80, %c0_81, %c0_82, %c0_83] : memref<3x3x128x128xbf16, #tpu.memory_space<vmem>>, vector<1x1x128x128xbf16>
    %288 = vector.shape_cast %287 : vector<1x1x128x128xbf16> to vector<128x128xbf16>
    %cst_84 = arith.constant dense<0.000000e+00> : vector<8x128xf32>
    %289 = tpu.matmul %286, %288, %cst_84 {dimension_numbers = #tpu.dot_dimension_numbers<[1], [0], [0], [1], [0, 0, 1, 1], [], []>} : vector<8x128xbf16>, vector<128x128xbf16>, vector<8x128xf32> -> vector<8x128xf32>
    %290 = arith.truncf %289 : vector<8x128xf32> to vector<8x128xbf16>
    %291 = arith.truncf %285 : vector<8x128xf32> to vector<8x128xbf16>
    %c2_85 = arith.constant 2 : index
    %c1_86 = arith.constant 1 : index
    %c0_87 = arith.constant 0 : index
    %c0_88 = arith.constant 0 : index
    %292 = vector.load %arg6[%c2_85, %c1_86, %c0_87, %c0_88] : memref<3x3x128x128xbf16, #tpu.memory_space<vmem>>, vector<1x1x128x128xbf16>
    %293 = vector.shape_cast %292 : vector<1x1x128x128xbf16> to vector<128x128xbf16>
    %cst_89 = arith.constant dense<0.000000e+00> : vector<8x128xf32>
    %294 = tpu.matmul %291, %293, %cst_89 {dimension_numbers = #tpu.dot_dimension_numbers<[1], [0], [0], [1], [0, 0, 1, 1], [], []>} : vector<8x128xbf16>, vector<128x128xbf16>, vector<8x128xf32> -> vector<8x128xf32>
    %295 = arith.truncf %294 : vector<8x128xf32> to vector<8x128xbf16>
    %296 = arith.truncf %285 : vector<8x128xf32> to vector<8x128xbf16>
    %c2_90 = arith.constant 2 : index
    %c2_91 = arith.constant 2 : index
    %c0_92 = arith.constant 0 : index
    %c0_93 = arith.constant 0 : index
    %297 = vector.load %arg6[%c2_90, %c2_91, %c0_92, %c0_93] : memref<3x3x128x128xbf16, #tpu.memory_space<vmem>>, vector<1x1x128x128xbf16>
    %298 = vector.shape_cast %297 : vector<1x1x128x128xbf16> to vector<128x128xbf16>
    %cst_94 = arith.constant dense<0.000000e+00> : vector<8x128xf32>
    %299 = tpu.matmul %296, %298, %cst_94 {dimension_numbers = #tpu.dot_dimension_numbers<[1], [0], [0], [1], [0, 0, 1, 1], [], []>} : vector<8x128xbf16>, vector<128x128xbf16>, vector<8x128xf32> -> vector<8x128xf32>
    %300 = arith.truncf %299 : vector<8x128xf32> to vector<8x128xbf16>
    %301 = tpu.concatenate %290, %295, %300 in 0 : vector<8x128xbf16>, vector<8x128xbf16>, vector<8x128xbf16> -> vector<24x128xbf16>
    %cst_95 = arith.constant dense<0.000000e+00> : vector<8x128xf32>
    %302 = tpu.matmul %247, %301, %cst_95 {dimension_numbers = #tpu.dot_dimension_numbers<[1], [0], [0], [1], [0, 0, 1, 1], [], []>} : vector<8x24xbf16>, vector<24x128xbf16>, vector<8x128xf32> -> vector<8x128xf32>
    %c0_96 = arith.constant 0 : index
    %c0_97 = arith.constant 0 : index
    %303 = vector.load %arg8[%c0_96, %c0_97] : memref<8x128xf32, #tpu.memory_space<vmem>>, vector<8x128xf32>
    tpu.vector_store %arg8[%c0_96, %c0_97], %302 {strides = array<i32>} : memref<8x128xf32, #tpu.memory_space<vmem>>, vector<8x128xf32>,
    return
  }
}

</mosaic_0001>

<bundles_post_ra>
// kernel: tpu_custom_call.1
= control target key start
LH: loop header
LB: loop body
LE: loop exit
PB: predicated region body
PF: predicated region fallthrough
CT: control target
= control target key end

     0   :  { %13 = vsyncpa [#allocation3], 0  ;;  %s4197_s0 = inlined_call_operand.hbm [shape: bf16[64,128], index: 0, kind: input, shape index: {}]   ;;  %s4198_s1 = inlined_call_operand.hbm [shape: bf16[128,512], index: 1, kind: input, shape index: {}]   ;;  %s4199_s2 = inlined_call_operand.hbm [shape: f32[1,512], index: 2, kind: input, shape index: {}]   ;;  %s4200_s3 = inlined_call_operand.hbm [shape: bf16[128,512], index: 3, kind: input, shape index: {}]   ;;  %s4201_s4 = inlined_call_operand.hbm [shape: bf16[128,128], index: 4, kind: input, shape index: {}]   ;;  %s4202_s5 = inlined_call_operand.vmem [shape: f32[1,128], index: 5, kind: input, shape index: {}]   ;;  %s4203_s6 = inlined_call_operand.hbm [shape: bf16[3,3,128,128], index: 6, kind: input, shape index: {}]   ;;  %s4204_s7 = inlined_call_operand.vmem [shape: bf16[8,24], index: 7, kind: input, shape index: {}]   ;;  %s4205_s8 = inlined_call_operand.hbm [shape: f32[8,128], index: 8, kind: output, shape index: {}]  }
   0x1   :  { %14 = vsyncpa [#allocation6], 0 }
   0x2   :  { %15 = vsyncpa [#allocation9], 0 }
   0x3   :  { %16 = vsyncpa [#allocation12], 0  ;;  %s35_s29 = sshll.u32 %s4198_s1, 4  ;;  %s36_s29 = int_to_ptr.hbm [resolvable:$true] %s35_s29 }
   0x4   :  { %17 = vsyncpa [#allocation4], 0  ;;  %s3603_s30 = smov [#allocation5]   ;;  %s59_s12 = sshll.u32 %s4200_s3, 4  ;;  %s60_s12 = int_to_ptr.hbm [resolvable:$true] %s59_s12 }
   0x5   :  { %s37_s9 = sshll.u32 %s3603_s30, 4  ;;  %s3604_s13 = smov 256   ;;  %s38_s9 = int_to_ptr.vmem [resolvable:$true] %s37_s9 }
   0x6   :  { %s3605_s14 = smov 16   ;;  %s3606_s15 = smov [#allocation8]  }
   0x7   :  { %43 = dma.hbm_to_vmem [thread:$0]  %s36_s29, 4096, %s38_s9, [#allocation6], %s3604_s13, %s3604_s13, %s3605_s14  }
   0x8   :  { %s61_s16 = sshll.u32 %s3606_s15, 4  ;;  %s22_s19 = sshll.u32 %s4197_s0, 4  ;;  %s62_s16 = int_to_ptr.vmem [resolvable:$true] %s61_s16  ;;  %s23_s19 = int_to_ptr.hbm [resolvable:$true] %s22_s19 }
   0x9   :  { %67 = dma.hbm_to_vmem [thread:$0]  %s60_s12, 4096, %s62_s16, [#allocation9], %s3604_s13, %s3604_s13, %s3605_s14  }
   0xa   :  { %s3607_s1 = smov [#allocation2]   ;;  %s49_s3 = sshll.u32 %s4199_s2, 4  ;;  %s50_s3 = int_to_ptr.hbm [resolvable:$true] %s49_s3 }
   0xb   :  { %s24_s20 = sshll.u32 %s3607_s1, 4  ;;  %s3608_s23 = smov 64   ;;  %s25_s20 = int_to_ptr.vmem [resolvable:$true] %s24_s20 }
   0xc   :  { %s3609_s24 = smov 4   ;;  %s3610_s25 = smov [#allocation7]  }
   0xd   :  { %30 = dma.hbm_to_vmem [thread:$0]  %s23_s19, 512, %s25_s20, [#allocation3], %s3608_s23, %s3608_s23, %s3609_s24  }
   0xe   :  { %s51_s26 = sshll.u32 %s3610_s25, 4  ;;  %s72_s0 = sshll.u32 %s4201_s4, 4  ;;  %s52_s26 = int_to_ptr.vmem [resolvable:$true] %s51_s26  ;;  %s73_s0 = int_to_ptr.hbm [resolvable:$true] %s72_s0 }
   0xf   :  { %54 = dma.hbm_to_vmem [thread:$0]  %s50_s3, 64, %s52_s26, [#allocation6]  }
  0x10   :  { %s87_s9 = sshll.u32 %s4203_s6, 4  ;;  %s3611_s10 = smov [#allocation10]   ;;  %s88_s9 = int_to_ptr.hbm [resolvable:$true] %s87_s9 }
  0x11   :  { %s74_s11 = sshll.u32 %s3611_s10, 4  ;;  %s3612_s2 = smov [#allocation11]   ;;  %s75_s11 = int_to_ptr.vmem [resolvable:$true] %s74_s11 }
  0x12   :  { %80 = dma.hbm_to_vmem [thread:$0]  %s73_s0, 1024, %s75_s11, [#allocation9], %s3608_s23, %s3608_s23, %s3609_s24  }
  0x13   :  { %s89_s12 = sshll.u32 %s3612_s2, 4  ;;  %s90_s12 = int_to_ptr.vmem [resolvable:$true] %s89_s12 }
  0x14   :  { %95 = dma.hbm_to_vmem [thread:$0]  %s88_s9, 9216, %s90_s12, [#allocation12], %s3608_s23, %s3608_s23, %s3609_s24  }
  0x15   :  { %3593 = dma.done.wait [#allocation3], 512  }
  0x16   :  { %3594 = vsyncadd [#allocation3], 4294966784 }
  0x17   :  { %3595 = dma.done.wait [#allocation6], 4160  }
  0x18   :  { %3596 = vsyncadd [#allocation6], 4294963136 }
  0x19   :  { %3597 = dma.done.wait [#allocation9], 5120  }
  0x1a   :  { %3598 = vsyncadd [#allocation9], 4294962176 }
  0x1b   :  { %3599 = dma.done.wait [#allocation12], 9216  }
  0x1c   :  { %3600 = vsyncadd [#allocation12], 4294958080  ;;  %v2647_v0 = vld [vmem:[#allocation5 + $0xe0] sm:$0xf]  ;;  %v3170_v1 = vld [vmem:[#allocation5 + $0xec] sm:$0xf0] }
  0x1d   :  { %v3168_v2 = vld [vmem:[#allocation5 + $0xe4] sm:$0xf]  ;;  %v2648_v3 = vor.u32 %v3170_v1, %v2647_v0  ;;  %v2649_v4 = vld [vmem:[#allocation5 + $0xf0] sm:$0xf0]  ;;  %v2655_v5 = vld [vmem:[#allocation5 + $0xe8] sm:$0xf] }
  0x1e   :  { %v3171_v6 = vld [vmem:[#allocation5 + $0xf4] sm:$0xf0]  ;;  %v2652_v7 = vor.u32 %v3168_v2, %v2649_v4  ;;  %v3169_v9 = vld [vmem:[#allocation5 + $0xec] sm:$0xf]  ;;  %v2657_v10 = vld [vmem:[#allocation5 + $0xf8] sm:$0xf0] }
  0x1f   :  { %v2656_v8 = vor.u32 %v3171_v6, %v2655_v5  ;;  %v2631_v11 = vld [vmem:[#allocation5 + $0xc0] sm:$0xf]  ;;  %357 = vmatpush.bf16.msra.mxu0 %v2648_v3  ;;  %v2660_v12 = vor.u32 %v3169_v9, %v2657_v10  ;;  %v3166_v13 = vld [vmem:[#allocation5 + $0xcc] sm:$0xf0]  ;;  %v3164_v14 = vld [vmem:[#allocation5 + $0xc4] sm:$0xf] }
  0x20   :  { %v2633_v15 = vld [vmem:[#allocation5 + $0xd0] sm:$0xf0]  ;;  %386 = vmatpush.bf16.msra.mxu1 %v2652_v7  ;;  %v2632_v16 = vor.u32 %v3166_v13, %v2631_v11  ;;  %v2639_v18 = vld [vmem:[#allocation5 + $0xc8] sm:$0xf]  ;;  %v3167_v19 = vld [vmem:[#allocation5 + $0xd4] sm:$0xf0] }
  0x21   :  { %415 = vmatpush.bf16.msra.mxu2 %v2656_v8  ;;  %v2636_v17 = vor.u32 %v3164_v14, %v2633_v15  ;;  %v3165_v20 = vld [vmem:[#allocation5 + $0xcc] sm:$0xf]  ;;  %444 = vmatpush.bf16.msra.mxu3 %v2660_v12  ;;  %v2640_v21 = vor.u32 %v3167_v19, %v2639_v18  ;;  %v2641_v22 = vld [vmem:[#allocation5 + $0xd8] sm:$0xf0]  ;;  %v2615_v23 = vld [vmem:[#allocation5 + $0xa0] sm:$0xf] }
  0x22   :  { %v3162_v24 = vld [vmem:[#allocation5 + $0xac] sm:$0xf0]  ;;  %v2644_v25 = vor.u32 %v3165_v20, %v2641_v22  ;;  %v3160_v26 = vld [vmem:[#allocation5 + $0xa4] sm:$0xf]  ;;  %v2617_v27 = vld [vmem:[#allocation5 + $0xb0] sm:$0xf0] }
  0x23   :  { %v2623_v28 = vld [vmem:[#allocation5 + $0xa8] sm:$0xf]  ;;  %358 = vmatpush.bf16.msra.mxu0 %v2632_v16  ;;  %v2616_v29 = vor.u32 %v3162_v24, %v2615_v23  ;;  %v3163_v30 = vld [vmem:[#allocation5 + $0xb4] sm:$0xf0]  ;;  %v3161_v31 = vld [vmem:[#allocation5 + $0xac] sm:$0xf]  ;;  %v2620_v33 = vor.u32 %v3160_v26, %v2617_v27 }
  0x24   :  { %v2625_v32 = vld [vmem:[#allocation5 + $0xb8] sm:$0xf0]  ;;  %387 = vmatpush.bf16.msra.mxu1 %v2636_v17  ;;  %v2624_v34 = vor.u32 %v3163_v30, %v2623_v28  ;;  %v2599_v35 = vld [vmem:[#allocation5 + $0x80] sm:$0xf]  ;;  %v3158_v36 = vld [vmem:[#allocation5 + $0x8c] sm:$0xf0] }
  0x25   :  { %416 = vmatpush.bf16.msra.mxu2 %v2640_v21  ;;  %v3156_v37 = vld [vmem:[#allocation5 + $0x84] sm:$0xf]  ;;  %445 = vmatpush.bf16.msra.mxu3 %v2644_v25  ;;  %v2628_v38 = vor.u32 %v3161_v31, %v2625_v32  ;;  %v2601_v39 = vld [vmem:[#allocation5 + $0x90] sm:$0xf0]  ;;  %v2607_v40 = vld [vmem:[#allocation5 + $0x88] sm:$0xf]  ;;  %v2600_v44 = vor.u32 %v3158_v36, %v2599_v35 }
  0x26   :  { %v3159_v41 = vld [vmem:[#allocation5 + $0x94] sm:$0xf0]  ;;  %v3157_v42 = vld [vmem:[#allocation5 + $0x8c] sm:$0xf]  ;;  %v2609_v43 = vld [vmem:[#allocation5 + $0x98] sm:$0xf0]  ;;  %v2604_v45 = vor.u32 %v3156_v37, %v2601_v39 }
  0x27   :  { %359 = vmatpush.bf16.msra.mxu0 %v2616_v29  ;;  %v2608_v46 = vor.u32 %v3159_v41, %v2607_v40  ;;  %v2583_v47 = vld [vmem:[#allocation5 + $0x60] sm:$0xf]  ;;  %v3154_v48 = vld [vmem:[#allocation5 + $0x6c] sm:$0xf0]  ;;  %v3152_v49 = vld [vmem:[#allocation5 + $0x64] sm:$0xf]  ;;  %v2612_v50 = vor.u32 %v3157_v42, %v2609_v43 }
  0x28   :  { %388 = vmatpush.bf16.msra.mxu1 %v2620_v33  ;;  %v2585_v51 = vld [vmem:[#allocation5 + $0x70] sm:$0xf0]  ;;  %v2591_v52 = vld [vmem:[#allocation5 + $0x68] sm:$0xf]  ;;  %v3155_v53 = vld [vmem:[#allocation5 + $0x74] sm:$0xf0]  ;;  %v2584_v56 = vor.u32 %v3154_v48, %v2583_v47 }
  0x29   :  { %417 = vmatpush.bf16.msra.mxu2 %v2624_v34  ;;  %446 = vmatpush.bf16.msra.mxu3 %v2628_v38  ;;  %v3153_v54 = vld [vmem:[#allocation5 + $0x6c] sm:$0xf]  ;;  %v2593_v55 = vld [vmem:[#allocation5 + $0x78] sm:$0xf0]  ;;  %v2588_v57 = vor.u32 %v3152_v49, %v2585_v51  ;;  %v2592_v58 = vor.u32 %v3155_v53, %v2591_v52  ;;  %v2567_v59 = vld [vmem:[#allocation5 + $0x40] sm:$0xf] }
  0x2a   :  { %v3150_v60 = vld [vmem:[#allocation5 + $0x4c] sm:$0xf0]  ;;  %v3148_v61 = vld [vmem:[#allocation5 + $0x44] sm:$0xf]  ;;  %v2596_v62 = vor.u32 %v3153_v54, %v2593_v55  ;;  %v2569_v63 = vld [vmem:[#allocation5 + $0x50] sm:$0xf0] }
  0x2b   :  { %360 = vmatpush.bf16.msra.mxu0 %v2600_v44  ;;  %v2575_v0 = vld [vmem:[#allocation5 + $0x48] sm:$0xf]  ;;  %v3151_v1 = vld [vmem:[#allocation5 + $0x54] sm:$0xf0]  ;;  %v3149_v2 = vld [vmem:[#allocation5 + $0x4c] sm:$0xf]  ;;  %v2568_v4 = vor.u32 %v3150_v60, %v2567_v59  ;;  %v2572_v5 = vor.u32 %v3148_v61, %v2569_v63 }
  0x2c   :  { %389 = vmatpush.bf16.msra.mxu1 %v2604_v45  ;;  %v2577_v3 = vld [vmem:[#allocation5 + $0x58] sm:$0xf0]  ;;  %v2576_v6 = vor.u32 %v3151_v1, %v2575_v0  ;;  %v2551_v7 = vld [vmem:[#allocation5 + $0x20] sm:$0xf]  ;;  %v3146_v8 = vld [vmem:[#allocation5 + $0x2c] sm:$0xf0] }
  0x2d   :  { %418 = vmatpush.bf16.msra.mxu2 %v2608_v46  ;;  %447 = vmatpush.bf16.msra.mxu3 %v2612_v50  ;;  %v3144_v9 = vld [vmem:[#allocation5 + $0x24] sm:$0xf]  ;;  %v2580_v10 = vor.u32 %v3149_v2, %v2577_v3  ;;  %v2553_v11 = vld [vmem:[#allocation5 + $0x30] sm:$0xf0]  ;;  %v2559_v12 = vld [vmem:[#allocation5 + $0x28] sm:$0xf]  ;;  %v2552_v16 = vor.u32 %v3146_v8, %v2551_v7 }
  0x2e   :  { %v3147_v13 = vld [vmem:[#allocation5 + $0x34] sm:$0xf0]  ;;  %v3145_v14 = vld [vmem:[#allocation5 + $0x2c] sm:$0xf]  ;;  %v2561_v15 = vld [vmem:[#allocation5 + $0x38] sm:$0xf0]  ;;  %v2556_v18 = vor.u32 %v3144_v9, %v2553_v11 }
  0x2f   :  { %361 = vmatpush.bf16.msra.mxu0 %v2584_v56  ;;  %v2535_v17 = vld [vmem:[#allocation5] sm:$0xf]  ;;  %v2560_v19 = vor.u32 %v3147_v13, %v2559_v12  ;;  %v3142_v20 = vld [vmem:[#allocation5 + $0xc] sm:$0xf0]  ;;  %v3140_v21 = vld [vmem:[#allocation5 + $0x4] sm:$0xf]  ;;  %v2564_v23 = vor.u32 %v3145_v14, %v2561_v15 }
  0x30   :  { %390 = vmatpush.bf16.msra.mxu1 %v2588_v57  ;;  %v2537_v22 = vld [vmem:[#allocation5 + $0x10] sm:$0xf0]  ;;  %v2543_v24 = vld [vmem:[#allocation5 + $0x8] sm:$0xf]  ;;  %v3143_v25 = vld [vmem:[#allocation5 + $0x14] sm:$0xf0]  ;;  %v2536_v30 = vor.u32 %v3142_v20, %v2535_v17 }
  0x31   :  { %419 = vmatpush.bf16.msra.mxu2 %v2592_v58  ;;  %448 = vmatpush.bf16.msra.mxu3 %v2596_v62  ;;  %v3141_v26 = vld [vmem:[#allocation5 + $0xc] sm:$0xf]  ;;  %v2545_v27 = vld [vmem:[#allocation5 + $0x18] sm:$0xf0]  ;;  %v2775_v28 = vld [vmem:[#allocation8 + $0xe0] sm:$0xf]  ;;  %v2540_v33 = vor.u32 %v3140_v21, %v2537_v22  ;;  %v2544_v34 = vor.u32 %v3143_v25, %v2543_v24 }
  0x32   :  { %v3202_v29 = vld [vmem:[#allocation8 + $0xec] sm:$0xf0]  ;;  %v3200_v31 = vld [vmem:[#allocation8 + $0xe4] sm:$0xf]  ;;  %v2777_v32 = vld [vmem:[#allocation8 + $0xf0] sm:$0xf0]  ;;  %v2548_v37 = vor.u32 %v3141_v26, %v2545_v27 }
  0x33   :  { %362 = vmatpush.bf16.msra.mxu0 %v2568_v4  ;;  %v3136_v35 = vld [vmem:[#allocation2] sm:$0xff]  ;;  %v3201_v36 = vld [vmem:[#allocation8 + $0xec] sm:$0xf]  ;;  %v3678_v38 = vor.u32 %v3202_v29, %v2775_v28  ;;  %v2783_v39 = vld [vmem:[#allocation8 + $0xe8] sm:$0xf]  ;;  %v3680_v41 = vor.u32 %v3200_v31, %v2777_v32  ;;  %s2504_s17 = sshll.u32 %s4205_s8, 4  ;;  %s2505_s17 = int_to_ptr.hbm [resolvable:$true] %s2504_s17 }
  0x34   :  { %391 = vmatpush.bf16.msra.mxu1 %v2572_v5  ;;  %v3203_v40 = vld [vmem:[#allocation8 + $0xf4] sm:$0xf0]  ;;  %v2785_v42 = vld [vmem:[#allocation8 + $0xf8] sm:$0xf0]  ;;  %v2759_v43 = vld [vmem:[#allocation8 + $0xc0] sm:$0xf] }
  0x35   :  { %420 = vmatpush.bf16.msra.mxu2 %v2576_v6  ;;  %449 = vmatpush.bf16.msra.mxu3 %v2580_v10  ;;  %v3198_v44 = vld [vmem:[#allocation8 + $0xcc] sm:$0xf0]  ;;  %v3196_v45 = vld [vmem:[#allocation8 + $0xc4] sm:$0xf]  ;;  %v2761_v46 = vld [vmem:[#allocation8 + $0xd0] sm:$0xf0]  ;;  %v3682_v47 = vor.u32 %v3203_v40, %v2783_v39  ;;  %v3685_v48 = vor.u32 %v3201_v36, %v2785_v42 }
  0x36   :  { %v3687_v49 = vor.u32 %v3198_v44, %v2759_v43  ;;  %v3197_v50 = vld [vmem:[#allocation8 + $0xcc] sm:$0xf]  ;;  %v3690_v51 = vor.u32 %v3196_v45, %v2761_v46  ;;  %v2769_v52 = vld [vmem:[#allocation8 + $0xd8] sm:$0xf0]  ;;  %v2743_v53 = vld [vmem:[#allocation8 + $0xa0] sm:$0xf] }
  0x37   :  { %363 = vmatpush.bf16.msra.mxu0 %v2552_v16  ;;  %v3194_v54 = vld [vmem:[#allocation8 + $0xac] sm:$0xf0]  ;;  %v3192_v55 = vld [vmem:[#allocation8 + $0xa4] sm:$0xf]  ;;  %v2745_v56 = vld [vmem:[#allocation8 + $0xb0] sm:$0xf0]  ;;  %v3695_v59 = vor.u32 %v3197_v50, %v2769_v52 }
  0x38   :  { %392 = vmatpush.bf16.msra.mxu1 %v2556_v18  ;;  %v2767_v57 = vld [vmem:[#allocation8 + $0xc8] sm:$0xf]  ;;  %v3199_v58 = vld [vmem:[#allocation8 + $0xd4] sm:$0xf0]  ;;  %v3697_v60 = vor.u32 %v3194_v54, %v2743_v53  ;;  %v3193_v61 = vld [vmem:[#allocation8 + $0xac] sm:$0xf]  ;;  %v3702_v0 = vor.u32 %v3192_v55, %v2745_v56 }
  0x39   :  { %421 = vmatpush.bf16.msra.mxu2 %v2560_v19  ;;  %450 = vmatpush.bf16.msra.mxu3 %v2564_v23  ;;  %v2753_v62 = vld [vmem:[#allocation8 + $0xb8] sm:$0xf0]  ;;  %v3699_v63 = vor.u32 %v3199_v58, %v2767_v57  ;;  %v2727_v1 = vld [vmem:[#allocation8 + $0x80] sm:$0xf]  ;;  %v3190_v2 = vld [vmem:[#allocation8 + $0x8c] sm:$0xf0] }
  0x3a   :  { %v2751_v3 = vld [vmem:[#allocation8 + $0xa8] sm:$0xf]  ;;  %v3188_v4 = vld [vmem:[#allocation8 + $0x84] sm:$0xf]  ;;  %v2729_v5 = vld [vmem:[#allocation8 + $0x90] sm:$0xf0]  ;;  %v3709_v8 = vor.u32 %v3193_v61, %v2753_v62  ;;  %v3711_v9 = vor.u32 %v3190_v2, %v2727_v1 }
  0x3b   :  { %364 = vmatpush.bf16.msra.mxu0 %v2536_v30  ;;  %v3195_v6 = vld [vmem:[#allocation8 + $0xb4] sm:$0xf0]  ;;  %v3189_v10 = vld [vmem:[#allocation8 + $0x8c] sm:$0xf]  ;;  %v2735_v11 = vld [vmem:[#allocation8 + $0x88] sm:$0xf]  ;;  %v3714_v13 = vor.u32 %v3188_v4, %v2729_v5 }
  0x3c   :  { %393 = vmatpush.bf16.msra.mxu1 %v2540_v33  ;;  %v3705_v7 = vor.u32 %v3195_v6, %v2751_v3  ;;  %v3191_v12 = vld [vmem:[#allocation8 + $0x94] sm:$0xf0]  ;;  %v2737_v14 = vld [vmem:[#allocation8 + $0x98] sm:$0xf0]  ;;  %v2711_v15 = vld [vmem:[#allocation8 + $0x60] sm:$0xf] }
  0x3d   :  { %422 = vmatpush.bf16.msra.mxu2 %v2544_v34  ;;  %451 = vmatpush.bf16.msra.mxu3 %v2548_v37  ;;  %v3186_v16 = vld [vmem:[#allocation8 + $0x6c] sm:$0xf0]  ;;  %v3184_v17 = vld [vmem:[#allocation8 + $0x64] sm:$0xf]  ;;  %v2713_v18 = vld [vmem:[#allocation8 + $0x70] sm:$0xf0]  ;;  %v3717_v19 = vor.u32 %v3191_v12, %v2735_v11  ;;  %v3721_v20 = vor.u32 %v3189_v10, %v2737_v14 }
  0x3e   :  { %365 = vmatmul.bf16.vlgmr.msra.gmra.mxu0 %v3136_v35  ;;  %v3723_v21 = vor.u32 %v3186_v16, %v2711_v15  ;;  %v3137_v22 = vld [vmem:[#allocation2 + $0x8] sm:$0xff]  ;;  %v3726_v23 = vor.u32 %v3184_v17, %v2713_v18  ;;  %v3185_v24 = vld [vmem:[#allocation8 + $0x6c] sm:$0xf]  ;;  %v2721_v25 = vld [vmem:[#allocation8 + $0x78] sm:$0xf0]  ;;  %v3613_v18 = vmov 0  }
  0x3f   :  { %665 = vmatpush.bf16.msrb.mxu0 %v3678_v38  ;;  %394 = vmatmul.bf16.vlgmr.msra.gmra.mxu1 %v3136_v35  ;;  %v3731_v26 = vor.u32 %v3185_v24, %v2721_v25  ;;  %v2719_v27 = vld [vmem:[#allocation8 + $0x68] sm:$0xf]  ;;  %v3187_v28 = vld [vmem:[#allocation8 + $0x74] sm:$0xf0]  ;;  %v2695_v30 = vld [vmem:[#allocation8 + $0x40] sm:$0xf] }
  0x40   :  { %678 = vmatpush.bf16.msrb.mxu1 %v3680_v41  ;;  %423 = vmatmul.bf16.vlgmr.msra.gmra.mxu2 %v3136_v35  ;;  %v3734_v29 = vor.u32 %v3187_v28, %v2719_v27  ;;  %v3182_v31 = vld [vmem:[#allocation8 + $0x4c] sm:$0xf0]  ;;  %v3180_v32 = vld [vmem:[#allocation8 + $0x44] sm:$0xf]  ;;  %v2697_v34 = vld [vmem:[#allocation8 + $0x50] sm:$0xf0] }
  0x41   :  { %452 = vmatmul.bf16.vlgmr.msra.gmra.mxu3 %v3136_v35  ;;  %691 = vmatpush.bf16.msrb.mxu2 %v3682_v47  ;;  %v3737_v33 = vor.u32 %v3182_v31, %v2695_v30  ;;  %v2703_v35 = vld [vmem:[#allocation8 + $0x48] sm:$0xf]  ;;  %v3183_v36 = vld [vmem:[#allocation8 + $0x54] sm:$0xf0]  ;;  %v3740_v37 = vor.u32 %v3180_v32, %v2697_v34  ;;  %v3181_v40 = vld [vmem:[#allocation8 + $0x4c] sm:$0xf] }
  0x42   :  { %704 = vmatpush.bf16.msrb.mxu3 %v3685_v48  ;;  %v3742_v39 = vor.u32 %v3183_v36, %v2703_v35  ;;  %v2705_v42 = vld [vmem:[#allocation8 + $0x58] sm:$0xf0]  ;;  %v2679_v43 = vld [vmem:[#allocation8 + $0x20] sm:$0xf]  ;;  %v3178_v45 = vld [vmem:[#allocation8 + $0x2c] sm:$0xf0] }
  0x43   :  { %666 = vmatpush.bf16.msrb.mxu0 %v3687_v49  ;;  %v3745_v44 = vor.u32 %v3181_v40, %v2705_v42  ;;  %v3176_v46 = vld [vmem:[#allocation8 + $0x24] sm:$0xf]  ;;  %v2681_v50 = vld [vmem:[#allocation8 + $0x30] sm:$0xf0]  ;;  %v3748_v52 = vor.u32 %v3178_v45, %v2679_v43  ;;  %v2687_v54 = vld [vmem:[#allocation8 + $0x28] sm:$0xf] }
  0x44   :  { %679 = vmatpush.bf16.msrb.mxu1 %v3690_v51  ;;  %v3750_v53 = vor.u32 %v3176_v46, %v2681_v50  ;;  %v3179_v55 = vld [vmem:[#allocation8 + $0x34] sm:$0xf0]  ;;  %v3177_v56 = vld [vmem:[#allocation8 + $0x2c] sm:$0xf]  ;;  %v2689_v58 = vld [vmem:[#allocation8 + $0x38] sm:$0xf0] }
  0x45   :  { %692 = vmatpush.bf16.msrb.mxu2 %v3699_v63  ;;  %v3754_v57 = vor.u32 %v3179_v55, %v2687_v54  ;;  %v2663_v61 = vld [vmem:[#allocation8] sm:$0xf]  ;;  %v3174_v62 = vld [vmem:[#allocation8 + $0xc] sm:$0xf0]  ;;  %v3756_v1 = vor.u32 %v3177_v56, %v2689_v58  ;;  %v3172_v2 = vld [vmem:[#allocation8 + $0x4] sm:$0xf] }
  0x46   :  { %705 = vmatpush.bf16.msrb.mxu3 %v3695_v59  ;;  %v2665_v3 = vld [vmem:[#allocation8 + $0x10] sm:$0xf0]  ;;  %v2671_v4 = vld [vmem:[#allocation8 + $0x8] sm:$0xf]  ;;  %v3759_v5 = vor.u32 %v3174_v62, %v2663_v61  ;;  %v3175_v6 = vld [vmem:[#allocation8 + $0x14] sm:$0xf0] }
  0x47   :  { %667 = vmatpush.bf16.msrb.mxu0 %v3697_v60  ;;  %v3173_v10 = vld [vmem:[#allocation8 + $0xc] sm:$0xf]  ;;  %v2673_v11 = vld [vmem:[#allocation8 + $0x18] sm:$0xf0]  ;;  %v3762_v12 = vor.u32 %v3172_v2, %v2665_v3  ;;  %v3766_v14 = vor.u32 %v3175_v6, %v2671_v4  ;;  %v3139_v17 = vld [vmem:[#allocation2 + $0x18] sm:$0xff] }
  0x48   :  { %680 = vmatpush.bf16.msrb.mxu1 %v3702_v0  ;;  %v3768_v15 = vor.u32 %v3173_v10, %v2673_v11  ;;  %v3138_v16 = vld [vmem:[#allocation2 + $0x10] sm:$0xff]  ;;  %v163_v31 = vld [vmem:[#allocation7] sm:$0xf] }
  0x49   :  { %693 = vmatpush.bf16.msrb.mxu2 %v3705_v7  ;;  %v3844_v32 = vperm.slane %v163_v31, 0  ;;  %v3848_v35 = vperm.slane %v163_v31, 1  ;;  %v3858_v46 = vperm.slane %v163_v31, 2  ;;  %v3860_v50 = vperm.slane %v163_v31, 3 }
  0x4a   :  { %706 = vmatpush.bf16.msrb.mxu3 %v3709_v8 }
  0x4b   :  { %668 = vmatpush.bf16.msrb.mxu0 %v3711_v9 }
  0x4c   :  { %681 = vmatpush.bf16.msrb.mxu1 %v3714_v13 }
  0x4d   :  { %694 = vmatpush.bf16.msrb.mxu2 %v3717_v19 }
  0x4e   :  { %707 = vmatpush.bf16.msrb.mxu3 %v3721_v20  ;;  %370 = vmatmul.bf16.gmra.mxu0 %v3137_v22 }
  0x4f   :  { %669 = vmatpush.bf16.msrb.mxu0 %v3723_v21  ;;  %399 = vmatmul.bf16.gmra.mxu1 %v3137_v22 }
  0x50   :  { %682 = vmatpush.bf16.msrb.mxu1 %v3726_v23  ;;  %428 = vmatmul.bf16.gmra.mxu2 %v3137_v22 }
  0x51   :  { %457 = vmatmul.bf16.gmra.mxu3 %v3137_v22  ;;  %695 = vmatpush.bf16.msrb.mxu2 %v3734_v29 }
  0x52   :  { %708 = vmatpush.bf16.msrb.mxu3 %v3731_v26 }
  0x53   :  { %670 = vmatpush.bf16.msrb.mxu0 %v3737_v33 }
  0x54   :  { %683 = vmatpush.bf16.msrb.mxu1 %v3740_v37 }
  0x55   :  { %696 = vmatpush.bf16.msrb.mxu2 %v3742_v39 }
  0x56   :  { %709 = vmatpush.bf16.msrb.mxu3 %v3745_v44 }
  0x57   :  { %671 = vmatpush.bf16.msrb.mxu0 %v3748_v52 }
  0x58   :  { %684 = vmatpush.bf16.msrb.mxu1 %v3750_v53 }
  0x59   :  { %697 = vmatpush.bf16.msrb.mxu2 %v3754_v57 }
  0x5a   :  { %710 = vmatpush.bf16.msrb.mxu3 %v3756_v1 }
  0x5b   :  { %672 = vmatpush.bf16.msrb.mxu0 %v3759_v5 }
  0x5c   :  { %685 = vmatpush.bf16.msrb.mxu1 %v3762_v12 }
  0x5d   :  { %698 = vmatpush.bf16.msrb.mxu2 %v3766_v14 }
  0x5e   :  { %711 = vmatpush.bf16.msrb.mxu3 %v3768_v15  ;;  %375 = vmatmul.bf16.gmra.mxu0 %v3138_v16 }
  0x5f   :  { %785 = vmatpush.bf16.msra.mxu0 %v3678_v38  ;;  %404 = vmatmul.bf16.gmra.mxu1 %v3138_v16 }
  0x60   :  { %798 = vmatpush.bf16.msra.mxu1 %v3680_v41  ;;  %433 = vmatmul.bf16.gmra.mxu2 %v3138_v16 }
  0x61   :  { %462 = vmatmul.bf16.gmra.mxu3 %v3138_v16  ;;  %811 = vmatpush.bf16.msra.mxu2 %v3682_v47 }
  0x62   :  { %824 = vmatpush.bf16.msra.mxu3 %v3685_v48 }
  0x63   :  { %786 = vmatpush.bf16.msra.mxu0 %v3687_v49 }
  0x64   :  { %799 = vmatpush.bf16.msra.mxu1 %v3690_v51 }
  0x65   :  { %812 = vmatpush.bf16.msra.mxu2 %v3699_v63 }
  0x66   :  { %825 = vmatpush.bf16.msra.mxu3 %v3695_v59 }
  0x67   :  { %787 = vmatpush.bf16.msra.mxu0 %v3697_v60 }
  0x68   :  { %800 = vmatpush.bf16.msra.mxu1 %v3702_v0 }
  0x69   :  { %813 = vmatpush.bf16.msra.mxu2 %v3705_v7 }
  0x6a   :  { %826 = vmatpush.bf16.msra.mxu3 %v3709_v8 }
  0x6b   :  { %788 = vmatpush.bf16.msra.mxu0 %v3711_v9 }
  0x6c   :  { %801 = vmatpush.bf16.msra.mxu1 %v3714_v13 }
  0x6d   :  { %814 = vmatpush.bf16.msra.mxu2 %v3717_v19 }
  0x6e   :  { %827 = vmatpush.bf16.msra.mxu3 %v3721_v20  ;;  %380 = vmatmul.bf16.gmra.mxu0 %v3139_v17 }
  0x6f   :  { %789 = vmatpush.bf16.msra.mxu0 %v3723_v21  ;;  %409 = vmatmul.bf16.gmra.mxu1 %v3139_v17 }
  0x70   :  { %802 = vmatpush.bf16.msra.mxu1 %v3726_v23  ;;  %438 = vmatmul.bf16.gmra.mxu2 %v3139_v17 }
  0x71   :  { %467 = vmatmul.bf16.gmra.mxu3 %v3139_v17  ;;  %815 = vmatpush.bf16.msra.mxu2 %v3734_v29 }
  0x72   :  { %828 = vmatpush.bf16.msra.mxu3 %v3731_v26 }
  0x73   :  { %790 = vmatpush.bf16.msra.mxu0 %v3737_v33 }
  0x74   :  { %803 = vmatpush.bf16.msra.mxu1 %v3740_v37 }
  0x75   :  { %816 = vmatpush.bf16.msra.mxu2 %v3742_v39 }
  0x76   :  { %829 = vmatpush.bf16.msra.mxu3 %v3745_v44 }
  0x77   :  { %791 = vmatpush.bf16.msra.mxu0 %v3748_v52 }
  0x78   :  { %804 = vmatpush.bf16.msra.mxu1 %v3750_v53 }
  0x79   :  { %817 = vmatpush.bf16.msra.mxu2 %v3754_v57 }
  0x7a   :  { %830 = vmatpush.bf16.msra.mxu3 %v3756_v1 }
  0x7b   :  { %792 = vmatpush.bf16.msra.mxu0 %v3759_v5 }
  0x7c   :  { %805 = vmatpush.bf16.msra.mxu1 %v3762_v12 }
  0x7d   :  { %818 = vmatpush.bf16.msra.mxu2 %v3766_v14 }
  0x7e   :  { %831 = vmatpush.bf16.msra.mxu3 %v3768_v15  ;;  %673 = vmatmul.bf16.vlgmr.msrb.gmra.mxu0 %v3613_v18 }
  0x7f   :  { %686 = vmatmul.bf16.vlgmr.msrb.gmra.mxu1 %v3613_v18  ;;  %905 = vmatpush.bf16.msrb.mxu0 %v3678_v38 }
  0x80   :  { %699 = vmatmul.bf16.vlgmr.msrb.gmra.mxu2 %v3613_v18  ;;  %918 = vmatpush.bf16.msrb.mxu1 %v3680_v41 }
  0x81   :  { %712 = vmatmul.bf16.vlgmr.msrb.gmra.mxu3 %v3613_v18  ;;  %931 = vmatpush.bf16.msrb.mxu2 %v3682_v47 }
  0x82   :  { %944 = vmatpush.bf16.msrb.mxu3 %v3685_v48 }
  0x83   :  { %906 = vmatpush.bf16.msrb.mxu0 %v3687_v49 }
  0x84   :  { %919 = vmatpush.bf16.msrb.mxu1 %v3690_v51 }
  0x85   :  { %932 = vmatpush.bf16.msrb.mxu2 %v3699_v63 }
  0x86   :  { %945 = vmatpush.bf16.msrb.mxu3 %v3695_v59 }
  0x87   :  { %907 = vmatpush.bf16.msrb.mxu0 %v3697_v60 }
  0x88   :  { %920 = vmatpush.bf16.msrb.mxu1 %v3702_v0 }
  0x89   :  { %933 = vmatpush.bf16.msrb.mxu2 %v3705_v7 }
  0x8a   :  { %946 = vmatpush.bf16.msrb.mxu3 %v3709_v8 }
  0x8b   :  { %908 = vmatpush.bf16.msrb.mxu0 %v3711_v9 }
  0x8c   :  { %921 = vmatpush.bf16.msrb.mxu1 %v3714_v13 }
  0x8d   :  { %934 = vmatpush.bf16.msrb.mxu2 %v3717_v19 }
  0x8e   :  { %947 = vmatpush.bf16.msrb.mxu3 %v3721_v20 }
  0x8f   :  { %909 = vmatpush.bf16.msrb.mxu0 %v3723_v21 }
  0x90   :  { %922 = vmatpush.bf16.msrb.mxu1 %v3726_v23 }
  0x91   :  { %935 = vmatpush.bf16.msrb.mxu2 %v3734_v29 }
  0x92   :  { %948 = vmatpush.bf16.msrb.mxu3 %v3731_v26 }
  0x93   :  { %910 = vmatpush.bf16.msrb.mxu0 %v3737_v33 }
  0x94   :  { %923 = vmatpush.bf16.msrb.mxu1 %v3740_v37 }
  0x95   :  { %936 = vmatpush.bf16.msrb.mxu2 %v3742_v39 }
  0x96   :  { %949 = vmatpush.bf16.msrb.mxu3 %v3745_v44 }
  0x97   :  { %911 = vmatpush.bf16.msrb.mxu0 %v3748_v52 }
  0x98   :  { %924 = vmatpush.bf16.msrb.mxu1 %v3750_v53 }
  0x99   :  { %937 = vmatpush.bf16.msrb.mxu2 %v3754_v57 }
  0x9a   :  { %950 = vmatpush.bf16.msrb.mxu3 %v3756_v1 }
  0x9b   :  { %912 = vmatpush.bf16.msrb.mxu0 %v3759_v5 }
  0x9c   :  { %925 = vmatpush.bf16.msrb.mxu1 %v3762_v12 }
  0x9d   :  { %938 = vmatpush.bf16.msrb.mxu2 %v3766_v14 }
  0x9e   :  { %951 = vmatpush.bf16.msrb.mxu3 %v3768_v15 }
  0xbb   :  { %v366_v22 = vpop.f32.mrf.mxu0 }
  0xbc   :  { %v395_v24 = vpop.f32.mrf.mxu1 }
  0xc3   :  { %v3838_v25 = vpop.f32.mrf.mxu2  ;;  %v3840_v28 = vpop.f32.mrf.mxu0 }
  0xc4   :  { %v453_v27 = vpop.f32.mrf.mxu3  ;;  %v3842_v30 = vpop.f32.mrf.mxu1 }
  0xcb   :  { %v3846_v34 = vpop.f32.mrf.mxu2  ;;  %v371_v40 = vpop.f32.mrf.mxu0 }
  0xcc   :  { %4206 = vst [vmem:[#allocation19_spill] sm:$0xff] %v3846_v34  ;;  %v3850_v36 = vpop.f32.mrf.mxu3  ;;  %v3853_v42 = vadd.f32 %v371_v40, %v3844_v32  ;;  %v400_v43 = vpop.f32.mrf.mxu1 }
  0xcd   :  { %v3856_v45 = vadd.f32 %v400_v43, %v3848_v35 }
  0xce   :  { %4207 = vst [vmem:[#allocation20_spill] sm:$0xff] %v3853_v42 }
  0xcf   :  { %4208 = vst [vmem:[#allocation21_spill] sm:$0xff] %v3856_v45 }
  0xd3   :  { %v429_v54 = vpop.f32.mrf.mxu2  ;;  %v3865_v58 = vpop.f32.mrf.mxu0 }
  0xd4   :  { %v3863_v55 = vadd.f32 %v429_v54, %v3858_v46  ;;  %v458_v56 = vpop.f32.mrf.mxu3  ;;  %4210 = vst [vmem:[#allocation23_spill] sm:$0xff] %v3865_v58  ;;  %v3870_v62 = vpop.f32.mrf.mxu1 }
  0xd5   :  { %v3868_v61 = vadd.f32 %v458_v56, %v3860_v50  ;;  %4212 = vst [vmem:[#allocation25_spill] sm:$0xff] %v3870_v62 }
  0xd6   :  { %4209 = vst [vmem:[#allocation22_spill] sm:$0xff] %v3863_v55 }
  0xd7   :  { %4211 = vst [vmem:[#allocation24_spill] sm:$0xff] %v3868_v61 }
  0xdb   :  { %v3872_v2 = vpop.f32.mrf.mxu2  ;;  %v376_v4 = vpop.f32.mrf.mxu0 }
  0xdc   :  { %4213 = vst [vmem:[#allocation26_spill] sm:$0xff] %v3872_v2  ;;  %v3874_v3 = vpop.f32.mrf.mxu3  ;;  %v3877_v6 = vadd.f32 %v376_v4, %v3844_v32  ;;  %v405_v10 = vpop.f32.mrf.mxu1 }
  0xdd   :  { %4214 = vst [vmem:[#allocation27_spill] sm:$0xff] %v3874_v3  ;;  %v3880_v11 = vadd.f32 %v405_v10, %v3848_v35 }
  0xde   :  { %4215 = vst [vmem:[#allocation28_spill] sm:$0xff] %v3877_v6 }
  0xdf   :  { %4216 = vst [vmem:[#allocation29_spill] sm:$0xff] %v3880_v11 }
  0xe3   :  { %v434_v16 = vpop.f32.mrf.mxu2  ;;  %v3885_v31 = vpop.f32.mrf.mxu0 }
  0xe4   :  { %v3883_v17 = vadd.f32 %v434_v16, %v3858_v46  ;;  %v463_v18 = vpop.f32.mrf.mxu3  ;;  %4218 = vst [vmem:[#allocation31_spill] sm:$0xff] %v3885_v31  ;;  %v3890_v43 = vpop.f32.mrf.mxu1 }
  0xe5   :  { %v3888_v40 = vadd.f32 %v463_v18, %v3860_v50  ;;  %4220 = vst [vmem:[#allocation33_spill] sm:$0xff] %v3890_v43 }
  0xe6   :  { %4217 = vst [vmem:[#allocation30_spill] sm:$0xff] %v3883_v17 }
  0xe7   :  { %4219 = vst [vmem:[#allocation32_spill] sm:$0xff] %v3888_v40 }
  0xeb   :  { %v3892_v54 = vpop.f32.mrf.mxu2  ;;  %v381_v4 = vpop.f32.mrf.mxu0 }
  0xec   :  { %4221 = vst [vmem:[#allocation34_spill] sm:$0xff] %v3892_v54  ;;  %v3894_v56 = vpop.f32.mrf.mxu3  ;;  %v3897_v10 = vadd.f32 %v381_v4, %v3844_v32  ;;  %v410_v11 = vpop.f32.mrf.mxu1  ;;  %v367_v4 = vadd.f32 %v366_v22, %v3844_v32  ;;  %v454_v22 = vadd.f32 %v453_v27, %v3860_v50 }
  0xed   :  { %4222 = vst [vmem:[#allocation35_spill] sm:$0xff] %v3894_v56  ;;  %v3900_v16 = vadd.f32 %v410_v11, %v3848_v35  ;;  %v396_v11 = vadd.f32 %v395_v24, %v3848_v35 }
  0xee   :  { %4223 = vst [vmem:[#allocation36_spill] sm:$0xff] %v3897_v10 }
  0xef   :  { %4224 = vst [vmem:[#allocation37_spill] sm:$0xff] %v3900_v16 }
  0xf3   :  { %v439_v17 = vpop.f32.mrf.mxu2  ;;  %v3905_v40 = vpop.f32.mrf.mxu0 }
  0xf4   :  { %v3903_v31 = vadd.f32 %v439_v17, %v3858_v46  ;;  %v468_v18 = vpop.f32.mrf.mxu3  ;;  %4226 = vst [vmem:[#allocation39_spill] sm:$0xff] %v3905_v40  ;;  %v412_v54 = vpop.f32.mrf.mxu1 }
  0xf5   :  { %v3908_v43 = vadd.f32 %v468_v18, %v3860_v50  ;;  %v3911_v56 = vadd.f32 %v412_v54, %v3848_v35 }
  0xf6   :  { %4225 = vst [vmem:[#allocation38_spill] sm:$0xff] %v3903_v31 }
  0xf7   :  { %4227 = vst [vmem:[#allocation40_spill] sm:$0xff] %v3908_v43 }
  0xf8   :  { %4228 = vst [vmem:[#allocation41_spill] sm:$0xff] %v3911_v56 }
  0xfb   :  { %v441_v10 = vpop.f32.mrf.mxu2  ;;  %v674_v31 = vpop.f32.mrf.mxu0 }
  0xfc   :  { %v3916_v16 = vadd.f32 %v441_v10, %v3858_v46  ;;  %v470_v17 = vpop.f32.mrf.mxu3  ;;  %v717_v40 = vadd.f32 %v674_v31, %v367_v4  ;;  %v687_v18 = vpop.f32.mrf.mxu1 }
  0xfd   :  { %v3919_v6 = vadd.f32 %v470_v17, %v3860_v50  ;;  %v718_v43 = vadd.f32 %v687_v18, %v396_v11 }
  0xfe   :  { %4229 = vst [vmem:[#allocation42_spill] sm:$0xff] %v3916_v16  ;;  %v2789_v2 = vmul.f32 -1.442695, %v717_v40 }
  0xff   :  { %4230 = vst [vmem:[#allocation43_spill] sm:$0xff] %v3919_v6  ;;  %v2790_v3 = vmul.f32 -1.442695, %v718_v43 }
 0x100   :  { %3297 = vpow2.f32 %v2789_v2  ;;  %v425_v2 = vadd.f32 %v3838_v25, %v3858_v46 }
 0x101   :  { %3299 = vpow2.f32 %v2790_v3 }
 0x103   :  { %v700_v54 = vpop.f32.mrf.mxu2  ;;  %v676_v24 = vpop.f32.mrf.mxu0 }
 0x104   :  { %v713_v56 = vpop.f32.mrf.mxu3  ;;  %v689_v10 = vpop.f32.mrf.mxu1  ;;  %v719_v43 = vadd.f32 %v700_v54, %v425_v2 }
 0x105   :  { %v720_v62 = vadd.f32 %v713_v56, %v454_v22 }
 0x106   :  { %v3298_v16 = vpop.eup %3297 }
 0x107   :  { %v2791_v58 = vmul.f32 -1.442695, %v720_v62  ;;  %v3300_v55 = vpop.eup %3299  ;;  %v724_v61 = vadd.f32 1.0, %v3298_v16 }
 0x108   :  { %v743_v17 = vadd.f32 1.0, %v3300_v55 }
 0x109   :  { %3301 = vpow2.f32 %v2791_v58  ;;  %v736_v16 = vand.u32 2147483648, %v724_v61  ;;  %v734_v24 = vand.u32 2147483647, %v724_v61  ;;  %vm730_vm2 = vweird.f32 %v724_v61 }
 0x10a   :  { %3303 = vrcp.f32 %v724_v61  ;;  %v755_v55 = vand.u32 2147483648, %v743_v17  ;;  %vm749_vm3 = vweird.f32 %v743_v17 }
 0x10b   :  { %3305 = vrcp.f32 %v743_v17  ;;  %v702_v31 = vpop.f32.mrf.mxu2  ;;  %v737_v54 = vor.u32 1.1754944e-38, %v736_v16  ;;  %vm735_vm5 = vcmp.eq.f32.partialorder %v734_v24, 8.507059e+37 }
 0x10c   :  { %v715_v40 = vpop.f32.mrf.mxu3  ;;  %v753_v31 = vand.u32 2147483647, %v743_v17 }
 0x10e   :  { %vm754_vm7 = vcmp.eq.f32.partialorder %v753_v31, 8.507059e+37 }
 0x10f   :  { %v3302_v3 = vpop.eup %3301 }
 0x110   :  { %v3304_v27 = vpop.eup %3303  ;;  %v763_v4 = vadd.f32 1.0, %v3302_v3  ;;  %v756_v3 = vor.u32 1.1754944e-38, %v755_v55 }
 0x111   :  { %v3306_v11 = vpop.eup %3305  ;;  %v726_v56 = vmul.f32 %v3304_v27, %v724_v61  ;;  %vm731_vm0 = vweird.f32 %v3304_v27 }
 0x112   :  { %v745_v18 = vmul.f32 %v3306_v11, %v743_v17  ;;  %3307 = vrcp.f32 %v763_v4  ;;  %vm750_vm1 = vweird.f32 %v3306_v11  ;;  %vm732_vm4 = vmor %vm730_vm2, %vm731_vm0  ;;  %v775_v16 = vand.u32 2147483648, %v763_v4 }
 0x113   :  { %v727_v62 = vsub.f32 1.0, %v726_v56  ;;  %3309 = vtanh.f32 %v719_v43  ;;  %vm751_vm6 = vmor %vm749_vm3, %vm750_vm1  ;;  %vm769_vm9 = vweird.f32 %v763_v4 }
 0x114   :  { %v746_v22 = vsub.f32 1.0, %v745_v18  ;;  %v776_v24 = vor.u32 1.1754944e-38, %v775_v16 }
 0x115   :  { %v728_v58 = vmul.f32 %v3304_v27, %v727_v62 }
 0x116   :  { %v747_v10 = vmul.f32 %v3306_v11, %v746_v22 }
 0x117   :  { %v729_v25 = vadd.f32 %v3304_v27, %v728_v58 }
 0x118   :  { %v3308_v40 = vpop.eup %3307  ;;  %v748_v2 = vadd.f32 %v3306_v11, %v747_v10 }
 0x119   :  { %v733_v6 = vsel %vm732_vm4, %v3304_v27, %v729_v25  ;;  %v765_v56 = vmul.f32 %v3308_v40, %v763_v4  ;;  %v3310_v43 = vpop.eup %3309  ;;  %vm770_vm8 = vweird.f32 %v3308_v40  ;;  %v773_v27 = vand.u32 2147483647, %v763_v4 }
 0x11a   :  { %v738_v18 = vsel %vm735_vm5, %v737_v54, %v733_v6  ;;  %v752_v62 = vsel %vm751_vm6, %v3306_v11, %v748_v2  ;;  %vm771_vm10 = vmor %vm769_vm9, %vm770_vm8 }
 0x11b   :  { %v757_v45 = vsel %vm754_vm7, %v756_v3, %v752_v62  ;;  %v780_v22 = vmul.f32 %v3310_v43, %v738_v18  ;;  %v766_v42 = vsub.f32 1.0, %v765_v56  ;;  %vm774_vm11 = vcmp.eq.f32.partialorder %v773_v27, 8.507059e+37 }
 0x11c   :  { %v779_v34 = vmul.f32 0.0, %v757_v45  ;;  %v456_v3 = vadd.f32 %v3850_v36, %v3860_v50 }
 0x11d   :  { %v767_v58 = vmul.f32 %v3308_v40, %v766_v42  ;;  %v398_v42 = vadd.f32 %v3842_v30, %v3848_v35 }
 0x11e   :  { %v3924_v61 = vadd.f32 %v780_v22, %v779_v34  ;;  %v369_v34 = vadd.f32 %v3840_v28, %v3844_v32 }
 0x11f   :  { %v768_v17 = vadd.f32 %v3308_v40, %v767_v58 }
 0x120   :  { %3311 = vtanh.f32 %v3924_v61 }
 0x121   :  { %v772_v55 = vsel %vm771_vm10, %v3308_v40, %v768_v17 }
 0x122   :  { %v777_v11 = vsel %vm774_vm11, %v776_v24, %v772_v55 }
 0x126   :  { %v3312_v6 = vpop.eup %3311 }
 0x127   :  { %v783_v10 = vmul.f32 %v3312_v6, %v777_v11  ;;  %v4231_v6 = vld [vmem:[#allocation19_spill] sm:$0xff] }
 0x128   :  { %v427_v36 = vadd.f32 %v4231_v6, %v3858_v46 }
 0x129   :  { %v784_v31 = vpack.c.bf16 %v783_v10, %v783_v10 }
 0x12b   :  { %793 = vmatmul.bf16.vlgmr.msra.gmra.mxu0 %v784_v31  ;;  %806 = vmatmul.bf16.vlgmr.msra.gmra.mxu1 %v784_v31 }
 0x12c   :  { %819 = vmatmul.bf16.vlgmr.msra.gmra.mxu2 %v784_v31  ;;  %832 = vmatmul.bf16.vlgmr.msra.gmra.mxu3 %v784_v31 }
 0x12d   :  { %1025 = vmatpush.bf16.msra.mxu0 %v3678_v38  ;;  %1038 = vmatpush.bf16.msra.mxu1 %v3680_v41 }
 0x12e   :  { %1051 = vmatpush.bf16.msra.mxu2 %v3682_v47  ;;  %1064 = vmatpush.bf16.msra.mxu3 %v3685_v48 }
 0x131   :  { %1026 = vmatpush.bf16.msra.mxu0 %v3687_v49  ;;  %1039 = vmatpush.bf16.msra.mxu1 %v3690_v51 }
 0x132   :  { %1052 = vmatpush.bf16.msra.mxu2 %v3699_v63  ;;  %1065 = vmatpush.bf16.msra.mxu3 %v3695_v59 }
 0x135   :  { %1027 = vmatpush.bf16.msra.mxu0 %v3697_v60  ;;  %1040 = vmatpush.bf16.msra.mxu1 %v3702_v0 }
 0x136   :  { %1053 = vmatpush.bf16.msra.mxu2 %v3705_v7  ;;  %1066 = vmatpush.bf16.msra.mxu3 %v3709_v8 }
 0x139   :  { %1028 = vmatpush.bf16.msra.mxu0 %v3711_v9  ;;  %1041 = vmatpush.bf16.msra.mxu1 %v3714_v13 }
 0x13a   :  { %1054 = vmatpush.bf16.msra.mxu2 %v3717_v19  ;;  %1067 = vmatpush.bf16.msra.mxu3 %v3721_v20 }
 0x13d   :  { %1029 = vmatpush.bf16.msra.mxu0 %v3723_v21  ;;  %1042 = vmatpush.bf16.msra.mxu1 %v3726_v23 }
 0x13e   :  { %1055 = vmatpush.bf16.msra.mxu2 %v3734_v29  ;;  %1068 = vmatpush.bf16.msra.mxu3 %v3731_v26 }
 0x141   :  { %1030 = vmatpush.bf16.msra.mxu0 %v3737_v33  ;;  %1043 = vmatpush.bf16.msra.mxu1 %v3740_v37 }
 0x142   :  { %1056 = vmatpush.bf16.msra.mxu2 %v3742_v39  ;;  %1069 = vmatpush.bf16.msra.mxu3 %v3745_v44 }
 0x145   :  { %1031 = vmatpush.bf16.msra.mxu0 %v3748_v52  ;;  %1044 = vmatpush.bf16.msra.mxu1 %v3750_v53 }
 0x146   :  { %1057 = vmatpush.bf16.msra.mxu2 %v3754_v57  ;;  %1070 = vmatpush.bf16.msra.mxu3 %v3756_v1 }
 0x149   :  { %1032 = vmatpush.bf16.msra.mxu0 %v3759_v5  ;;  %1045 = vmatpush.bf16.msra.mxu1 %v3762_v12 }
 0x14a   :  { %1058 = vmatpush.bf16.msra.mxu2 %v3766_v14  ;;  %1071 = vmatpush.bf16.msra.mxu3 %v3768_v15 }
 0x1a8   :  { %v794_v45 = vpop.f32.mrf.mxu0  ;;  %v807_v4 = vpop.f32.mrf.mxu1 }
 0x1a9   :  { %v837_v25 = vadd.f32 %v794_v45, %v369_v34  ;;  %v838_v40 = vadd.f32 %v807_v4, %v398_v42 }
 0x1ab   :  { %v2792_v54 = vmul.f32 -1.442695, %v837_v25  ;;  %v2793_v2 = vmul.f32 -1.442695, %v838_v40 }
 0x1ad   :  { %3313 = vpow2.f32 %v2792_v54 }
 0x1ae   :  { %3315 = vpow2.f32 %v2793_v2 }
 0x1af   :  { %v820_v56 = vpop.f32.mrf.mxu2  ;;  %v833_v43 = vpop.f32.mrf.mxu3 }
 0x1b0   :  { %v840_v18 = vadd.f32 %v833_v43, %v456_v3  ;;  %v796_v62 = vpop.f32.mrf.mxu0  ;;  %v809_v22 = vpop.f32.mrf.mxu1  ;;  %v839_v31 = vadd.f32 %v820_v56, %v427_v36 }
 0x1b2   :  { %v2794_v28 = vmul.f32 -1.442695, %v840_v18 }
 0x1b3   :  { %v3314_v58 = vpop.eup %3313 }
 0x1b4   :  { %v3316_v17 = vpop.eup %3315  ;;  %v844_v30 = vadd.f32 1.0, %v3314_v58  ;;  %3317 = vpow2.f32 %v2794_v28 }
 0x1b5   :  { %v863_v16 = vadd.f32 1.0, %v3316_v17 }
 0x1b6   :  { %3319 = vrcp.f32 %v844_v30  ;;  %v856_v40 = vand.u32 2147483648, %v844_v30  ;;  %v854_v3 = vand.u32 2147483647, %v844_v30  ;;  %vm850_vm14 = vweird.f32 %v844_v30 }
 0x1b7   :  { %3321 = vrcp.f32 %v863_v16  ;;  %v822_v27 = vpop.f32.mrf.mxu2  ;;  %v835_v55 = vpop.f32.mrf.mxu3  ;;  %v875_v54 = vand.u32 2147483648, %v863_v16  ;;  %v873_v18 = vand.u32 2147483647, %v863_v16  ;;  %vm869_vm15 = vweird.f32 %v863_v16 }
 0x1b8   :  { %v857_v56 = vor.u32 1.1754944e-38, %v856_v40  ;;  %vm855_vm2 = vcmp.eq.f32.partialorder %v854_v3, 8.507059e+37 }
 0x1b9   :  { %v876_v17 = vor.u32 1.1754944e-38, %v875_v54  ;;  %vm874_vm3 = vcmp.eq.f32.partialorder %v873_v18, 8.507059e+37  ;;  %v4232_v18 = vld [vmem:[#allocation20_spill] sm:$0xff] }
 0x1ba   :  { %v3318_v24 = vpop.eup %3317 }
 0x1bb   :  { %v883_v11 = vadd.f32 1.0, %v3318_v24 }
 0x1bc   :  { %v3320_v10 = vpop.eup %3319 }
 0x1bd   :  { %v3322_v34 = vpop.eup %3321  ;;  %v846_v42 = vmul.f32 %v3320_v10, %v844_v30  ;;  %3323 = vrcp.f32 %v883_v11  ;;  %vm851_vm12 = vweird.f32 %v3320_v10  ;;  %vm889_vm5 = vweird.f32 %v883_v11 }
 0x1be   :  { %v865_v45 = vmul.f32 %v3322_v34, %v863_v16  ;;  %3325 = vtanh.f32 %v839_v31  ;;  %vm870_vm13 = vweird.f32 %v3322_v34  ;;  %vm852_vm0 = vmor %vm850_vm14, %vm851_vm12 }
 0x1bf   :  { %v847_v4 = vsub.f32 1.0, %v846_v42  ;;  %vm871_vm1 = vmor %vm869_vm15, %vm870_vm13 }
 0x1c0   :  { %v866_v25 = vsub.f32 1.0, %v865_v45 }
 0x1c1   :  { %v848_v2 = vmul.f32 %v3320_v10, %v847_v4 }
 0x1c2   :  { %v867_v43 = vmul.f32 %v3322_v34, %v866_v25  ;;  %v895_v25 = vand.u32 2147483648, %v883_v11 }
 0x1c3   :  { %v3324_v62 = vpop.eup %3323  ;;  %v849_v22 = vadd.f32 %v3320_v10, %v848_v2 }
 0x1c4   :  { %v868_v28 = vadd.f32 %v3322_v34, %v867_v43  ;;  %v885_v58 = vmul.f32 %v3324_v62, %v883_v11  ;;  %v3326_v55 = vpop.eup %3325  ;;  %vm890_vm4 = vweird.f32 %v3324_v62  ;;  %v896_v54 = vor.u32 1.1754944e-38, %v895_v25 }
 0x1c5   :  { %v853_v27 = vsel %vm852_vm0, %v3320_v10, %v849_v22  ;;  %v893_v10 = vand.u32 2147483647, %v883_v11  ;;  %vm891_vm6 = vmor %vm889_vm5, %vm890_vm4  ;;  %v4233_v22 = vld [vmem:[#allocation21_spill] sm:$0xff] }
 0x1c6   :  { %v858_v24 = vsel %vm855_vm2, %v857_v56, %v853_v27  ;;  %v872_v6 = vsel %vm871_vm1, %v3322_v34, %v868_v28  ;;  %v886_v36 = vsub.f32 1.0, %v885_v58 }
 0x1c7   :  { %v877_v31 = vsel %vm874_vm3, %v876_v17, %v872_v6  ;;  %v900_v42 = vmul.f32 %v3326_v55, %v858_v24  ;;  %vm894_vm7 = vcmp.eq.f32.partialorder %v893_v10, 8.507059e+37  ;;  %v4234_v55 = vld [vmem:[#allocation24_spill] sm:$0xff] }
 0x1c8   :  { %v899_v45 = vmul.f32 %v877_v31, %v3924_v61  ;;  %v887_v4 = vmul.f32 %v3324_v62, %v886_v36 }
 0x1ca   :  { %v3968_v30 = vadd.f32 %v900_v42, %v899_v45  ;;  %v888_v16 = vadd.f32 %v3324_v62, %v887_v4 }
 0x1cc   :  { %3327 = vtanh.f32 %v3968_v30  ;;  %v892_v40 = vsel %vm891_vm6, %v3324_v62, %v888_v16 }
 0x1cd   :  { %v897_v2 = vsel %vm894_vm7, %v896_v54, %v892_v40 }
 0x1d2   :  { %v3328_v34 = vpop.eup %3327 }
 0x1d3   :  { %v903_v3 = vmul.f32 %v3328_v34, %v897_v2  ;;  %v4235_v2 = vld [vmem:[#allocation22_spill] sm:$0xff] }
 0x1d5   :  { %v904_v43 = vpack.c.bf16 %v903_v3, %v903_v3 }
 0x1d7   :  { %913 = vmatmul.bf16.vlgmr.msrb.gmra.mxu0 %v904_v43  ;;  %926 = vmatmul.bf16.vlgmr.msrb.gmra.mxu1 %v904_v43 }
 0x1d8   :  { %939 = vmatmul.bf16.vlgmr.msrb.gmra.mxu2 %v904_v43  ;;  %952 = vmatmul.bf16.vlgmr.msrb.gmra.mxu3 %v904_v43 }
 0x1d9   :  { %1145 = vmatpush.bf16.msrb.mxu0 %v3678_v38  ;;  %1158 = vmatpush.bf16.msrb.mxu1 %v3680_v41 }
 0x1da   :  { %1171 = vmatpush.bf16.msrb.mxu2 %v3682_v47  ;;  %1184 = vmatpush.bf16.msrb.mxu3 %v3685_v48 }
 0x1dd   :  { %1146 = vmatpush.bf16.msrb.mxu0 %v3687_v49  ;;  %1159 = vmatpush.bf16.msrb.mxu1 %v3690_v51 }
 0x1de   :  { %1172 = vmatpush.bf16.msrb.mxu2 %v3699_v63  ;;  %1185 = vmatpush.bf16.msrb.mxu3 %v3695_v59 }
 0x1e1   :  { %1147 = vmatpush.bf16.msrb.mxu0 %v3697_v60  ;;  %1160 = vmatpush.bf16.msrb.mxu1 %v3702_v0 }
 0x1e2   :  { %1173 = vmatpush.bf16.msrb.mxu2 %v3705_v7  ;;  %1186 = vmatpush.bf16.msrb.mxu3 %v3709_v8 }
 0x1e5   :  { %1148 = vmatpush.bf16.msrb.mxu0 %v3711_v9  ;;  %1161 = vmatpush.bf16.msrb.mxu1 %v3714_v13 }
 0x1e6   :  { %1174 = vmatpush.bf16.msrb.mxu2 %v3717_v19  ;;  %1187 = vmatpush.bf16.msrb.mxu3 %v3721_v20 }
 0x1e9   :  { %1149 = vmatpush.bf16.msrb.mxu0 %v3723_v21  ;;  %1162 = vmatpush.bf16.msrb.mxu1 %v3726_v23 }
 0x1ea   :  { %1175 = vmatpush.bf16.msrb.mxu2 %v3734_v29  ;;  %1188 = vmatpush.bf16.msrb.mxu3 %v3731_v26 }
 0x1ed   :  { %1150 = vmatpush.bf16.msrb.mxu0 %v3737_v33  ;;  %1163 = vmatpush.bf16.msrb.mxu1 %v3740_v37 }
 0x1ee   :  { %1176 = vmatpush.bf16.msrb.mxu2 %v3742_v39  ;;  %1189 = vmatpush.bf16.msrb.mxu3 %v3745_v44 }
 0x1f1   :  { %1151 = vmatpush.bf16.msrb.mxu0 %v3748_v52  ;;  %1164 = vmatpush.bf16.msrb.mxu1 %v3750_v53 }
 0x1f2   :  { %1177 = vmatpush.bf16.msrb.mxu2 %v3754_v57  ;;  %1190 = vmatpush.bf16.msrb.mxu3 %v3756_v1 }
 0x1f5   :  { %1152 = vmatpush.bf16.msrb.mxu0 %v3759_v5  ;;  %1165 = vmatpush.bf16.msrb.mxu1 %v3762_v12 }
 0x1f6   :  { %1178 = vmatpush.bf16.msrb.mxu2 %v3766_v14  ;;  %1191 = vmatpush.bf16.msrb.mxu3 %v3768_v15 }
 0x254   :  { %v914_v61 = vpop.f32.mrf.mxu0  ;;  %v927_v11 = vpop.f32.mrf.mxu1 }
 0x255   :  { %v957_v62 = vadd.f32 %v914_v61, %v4232_v18  ;;  %v958_v56 = vadd.f32 %v927_v11, %v4233_v22 }
 0x257   :  { %v2795_v28 = vmul.f32 -1.442695, %v957_v62  ;;  %v2796_v58 = vmul.f32 -1.442695, %v958_v56 }
 0x259   :  { %3329 = vpow2.f32 %v2795_v28 }
 0x25a   :  { %3331 = vpow2.f32 %v2796_v58 }
 0x25b   :  { %v940_v17 = vpop.f32.mrf.mxu2  ;;  %v953_v27 = vpop.f32.mrf.mxu3 }
 0x25c   :  { %v960_v24 = vadd.f32 %v953_v27, %v4234_v55  ;;  %v916_v6 = vpop.f32.mrf.mxu0  ;;  %v929_v36 = vpop.f32.mrf.mxu1  ;;  %v959_v3 = vadd.f32 %v940_v17, %v4235_v2 }
 0x25e   :  { %v2797_v31 = vmul.f32 -1.442695, %v960_v24 }
 0x25f   :  { %v3330_v42 = vpop.eup %3329 }
 0x260   :  { %v3332_v45 = vpop.eup %3331  ;;  %v964_v4 = vadd.f32 1.0, %v3330_v42  ;;  %3333 = vpow2.f32 %v2797_v31 }
 0x261   :  { %v983_v16 = vadd.f32 1.0, %v3332_v45 }
 0x262   :  { %3335 = vrcp.f32 %v964_v4  ;;  %v976_v22 = vand.u32 2147483648, %v964_v4  ;;  %v974_v58 = vand.u32 2147483647, %v964_v4  ;;  %vm970_vm10 = vweird.f32 %v964_v4 }
 0x263   :  { %3337 = vrcp.f32 %v983_v16  ;;  %v942_v25 = vpop.f32.mrf.mxu2  ;;  %v955_v10 = vpop.f32.mrf.mxu3  ;;  %v995_v56 = vand.u32 2147483648, %v983_v16  ;;  %v993_v55 = vand.u32 2147483647, %v983_v16  ;;  %vm989_vm11 = vweird.f32 %v983_v16 }
 0x264   :  { %v977_v17 = vor.u32 1.1754944e-38, %v976_v22  ;;  %vm975_vm14 = vcmp.eq.f32.partialorder %v974_v58, 8.507059e+37 }
 0x265   :  { %v996_v42 = vor.u32 1.1754944e-38, %v995_v56  ;;  %vm994_vm15 = vcmp.eq.f32.partialorder %v993_v55, 8.507059e+37  ;;  %v4237_v55 = vld [vmem:[#allocation25_spill] sm:$0xff] }
 0x266   :  { %v3334_v40 = vpop.eup %3333 }
 0x267   :  { %v1003_v54 = vadd.f32 1.0, %v3334_v40 }
 0x268   :  { %v3336_v34 = vpop.eup %3335 }
 0x269   :  { %v3338_v43 = vpop.eup %3337  ;;  %v966_v61 = vmul.f32 %v3336_v34, %v964_v4  ;;  %3339 = vrcp.f32 %v1003_v54  ;;  %vm971_vm8 = vweird.f32 %v3336_v34  ;;  %vm1009_vm1 = vweird.f32 %v1003_v54 }
 0x26a   :  { %v985_v11 = vmul.f32 %v3338_v43, %v983_v16  ;;  %3341 = vtanh.f32 %v959_v3  ;;  %vm990_vm9 = vweird.f32 %v3338_v43  ;;  %vm972_vm12 = vmor %vm970_vm10, %vm971_vm8 }
 0x26b   :  { %v967_v18 = vsub.f32 1.0, %v966_v61  ;;  %vm991_vm13 = vmor %vm989_vm11, %vm990_vm9 }
 0x26c   :  { %v986_v62 = vsub.f32 1.0, %v985_v11 }
 0x26d   :  { %v968_v28 = vmul.f32 %v3336_v34, %v967_v18 }
 0x26e   :  { %v987_v27 = vmul.f32 %v3338_v43, %v986_v62  ;;  %v1015_v62 = vand.u32 2147483648, %v1003_v54 }
 0x26f   :  { %v3340_v24 = vpop.eup %3339  ;;  %v969_v6 = vadd.f32 %v3336_v34, %v968_v28 }
 0x270   :  { %v988_v36 = vadd.f32 %v3338_v43, %v987_v27  ;;  %v1005_v31 = vmul.f32 %v3340_v24, %v1003_v54  ;;  %v3342_v25 = vpop.eup %3341  ;;  %vm1010_vm0 = vweird.f32 %v3340_v24  ;;  %v1016_v56 = vor.u32 1.1754944e-38, %v1015_v62 }
 0x271   :  { %v973_v45 = vsel %vm972_vm12, %v3336_v34, %v969_v6  ;;  %v1013_v34 = vand.u32 2147483647, %v1003_v54  ;;  %vm1011_vm2 = vmor %vm1009_vm1, %vm1010_vm0 }
 0x272   :  { %v978_v10 = vsel %vm975_vm14, %v977_v17, %v973_v45  ;;  %v992_v40 = vsel %vm991_vm13, %v3338_v43, %v988_v36  ;;  %v1006_v2 = vsub.f32 1.0, %v1005_v31 }
 0x273   :  { %v997_v3 = vsel %vm994_vm15, %v996_v42, %v992_v40  ;;  %v1020_v61 = vmul.f32 %v3342_v25, %v978_v10  ;;  %vm1014_vm3 = vcmp.eq.f32.partialorder %v1013_v34, 8.507059e+37  ;;  %v4238_v25 = vld [vmem:[#allocation27_spill] sm:$0xff] }
 0x274   :  { %v1019_v11 = vmul.f32 %v997_v3, %v3968_v30  ;;  %v1007_v18 = vmul.f32 %v3340_v24, %v1006_v2  ;;  %v4236_v30 = vld [vmem:[#allocation23_spill] sm:$0xff]  ;;  %v461_v10 = vadd.f32 %v4238_v25, %v3860_v50 }
 0x275   :  { %v374_v54 = vadd.f32 %v4236_v30, %v3844_v32 }
 0x276   :  { %v4008_v4 = vadd.f32 %v1020_v61, %v1019_v11  ;;  %v1008_v16 = vadd.f32 %v3340_v24, %v1007_v18 }
 0x278   :  { %3343 = vtanh.f32 %v4008_v4  ;;  %v1012_v22 = vsel %vm1011_vm2, %v3340_v24, %v1008_v16  ;;  %v403_v24 = vadd.f32 %v4237_v55, %v3848_v35 }
 0x279   :  { %v1017_v28 = vsel %vm1014_vm3, %v1016_v56, %v1012_v22 }
 0x27e   :  { %v3344_v43 = vpop.eup %3343 }
 0x27f   :  { %v1023_v58 = vmul.f32 %v3344_v43, %v1017_v28 }
 0x281   :  { %v1024_v27 = vpack.c.bf16 %v1023_v58, %v1023_v58  ;;  %v4239_v58 = vld [vmem:[#allocation26_spill] sm:$0xff] }
 0x283   :  { %1033 = vmatmul.bf16.vlgmr.msra.gmra.mxu0 %v1024_v27  ;;  %1046 = vmatmul.bf16.vlgmr.msra.gmra.mxu1 %v1024_v27 }
 0x284   :  { %1059 = vmatmul.bf16.vlgmr.msra.gmra.mxu2 %v1024_v27  ;;  %1072 = vmatmul.bf16.vlgmr.msra.gmra.mxu3 %v1024_v27  ;;  %v432_v27 = vadd.f32 %v4239_v58, %v3858_v46 }
 0x285   :  { %1265 = vmatpush.bf16.msra.mxu0 %v3678_v38  ;;  %1278 = vmatpush.bf16.msra.mxu1 %v3680_v41 }
 0x286   :  { %1291 = vmatpush.bf16.msra.mxu2 %v3682_v47  ;;  %1304 = vmatpush.bf16.msra.mxu3 %v3685_v48 }
 0x289   :  { %1266 = vmatpush.bf16.msra.mxu0 %v3687_v49  ;;  %1279 = vmatpush.bf16.msra.mxu1 %v3690_v51 }
 0x28a   :  { %1292 = vmatpush.bf16.msra.mxu2 %v3699_v63  ;;  %1305 = vmatpush.bf16.msra.mxu3 %v3695_v59 }
 0x28d   :  { %1267 = vmatpush.bf16.msra.mxu0 %v3697_v60  ;;  %1280 = vmatpush.bf16.msra.mxu1 %v3702_v0 }
 0x28e   :  { %1293 = vmatpush.bf16.msra.mxu2 %v3705_v7  ;;  %1306 = vmatpush.bf16.msra.mxu3 %v3709_v8 }
 0x291   :  { %1268 = vmatpush.bf16.msra.mxu0 %v3711_v9  ;;  %1281 = vmatpush.bf16.msra.mxu1 %v3714_v13 }
 0x292   :  { %1294 = vmatpush.bf16.msra.mxu2 %v3717_v19  ;;  %1307 = vmatpush.bf16.msra.mxu3 %v3721_v20 }
 0x295   :  { %1269 = vmatpush.bf16.msra.mxu0 %v3723_v21  ;;  %1282 = vmatpush.bf16.msra.mxu1 %v3726_v23 }
 0x296   :  { %1295 = vmatpush.bf16.msra.mxu2 %v3734_v29  ;;  %1308 = vmatpush.bf16.msra.mxu3 %v3731_v26 }
 0x299   :  { %1270 = vmatpush.bf16.msra.mxu0 %v3737_v33  ;;  %1283 = vmatpush.bf16.msra.mxu1 %v3740_v37 }
 0x29a   :  { %1296 = vmatpush.bf16.msra.mxu2 %v3742_v39  ;;  %1309 = vmatpush.bf16.msra.mxu3 %v3745_v44 }
 0x29d   :  { %1271 = vmatpush.bf16.msra.mxu0 %v3748_v52  ;;  %1284 = vmatpush.bf16.msra.mxu1 %v3750_v53 }
 0x29e   :  { %1297 = vmatpush.bf16.msra.mxu2 %v3754_v57  ;;  %1310 = vmatpush.bf16.msra.mxu3 %v3756_v1 }
 0x2a1   :  { %1272 = vmatpush.bf16.msra.mxu0 %v3759_v5  ;;  %1285 = vmatpush.bf16.msra.mxu1 %v3762_v12 }
 0x2a2   :  { %1298 = vmatpush.bf16.msra.mxu2 %v3766_v14  ;;  %1311 = vmatpush.bf16.msra.mxu3 %v3768_v15 }
 0x300   :  { %v1034_v6 = vpop.f32.mrf.mxu0  ;;  %v1047_v17 = vpop.f32.mrf.mxu1 }
 0x301   :  { %v1077_v36 = vadd.f32 %v1034_v6, %v374_v54  ;;  %v1078_v31 = vadd.f32 %v1047_v17, %v403_v24 }
 0x303   :  { %v2798_v42 = vmul.f32 -1.442695, %v1077_v36  ;;  %v2799_v45 = vmul.f32 -1.442695, %v1078_v31 }
 0x305   :  { %3345 = vpow2.f32 %v2798_v42 }
 0x306   :  { %3347 = vpow2.f32 %v2799_v45 }
 0x307   :  { %v1060_v40 = vpop.f32.mrf.mxu2  ;;  %v1073_v2 = vpop.f32.mrf.mxu3 }
 0x308   :  { %v1080_v3 = vadd.f32 %v1073_v2, %v461_v10  ;;  %v1036_v61 = vpop.f32.mrf.mxu0  ;;  %v1049_v11 = vpop.f32.mrf.mxu1  ;;  %v1079_v55 = vadd.f32 %v1060_v40, %v432_v27 }
 0x30a   :  { %v2800_v18 = vmul.f32 -1.442695, %v1080_v3 }
 0x30b   :  { %v3346_v16 = vpop.eup %3345 }
 0x30c   :  { %v3348_v62 = vpop.eup %3347  ;;  %v1084_v34 = vadd.f32 1.0, %v3346_v16  ;;  %3349 = vpow2.f32 %v2800_v18 }
 0x30d   :  { %v1103_v22 = vadd.f32 1.0, %v3348_v62 }
 0x30e   :  { %3351 = vrcp.f32 %v1084_v34  ;;  %v1096_v42 = vand.u32 2147483648, %v1084_v34  ;;  %v1094_v10 = vand.u32 2147483647, %v1084_v34  ;;  %vm1090_vm6 = vweird.f32 %v1084_v34 }
 0x30f   :  { %3353 = vrcp.f32 %v1103_v22  ;;  %v1062_v56 = vpop.f32.mrf.mxu2  ;;  %v1075_v43 = vpop.f32.mrf.mxu3  ;;  %v1115_v45 = vand.u32 2147483648, %v1103_v22  ;;  %v1113_v3 = vand.u32 2147483647, %v1103_v22  ;;  %vm1109_vm7 = vweird.f32 %v1103_v22 }
 0x310   :  { %v1097_v40 = vor.u32 1.1754944e-38, %v1096_v42  ;;  %vm1095_vm10 = vcmp.eq.f32.partialorder %v1094_v10, 8.507059e+37 }
 0x311   :  { %v1116_v62 = vor.u32 1.1754944e-38, %v1115_v45  ;;  %vm1114_vm11 = vcmp.eq.f32.partialorder %v1113_v3, 8.507059e+37  ;;  %v4240_v3 = vld [vmem:[#allocation28_spill] sm:$0xff] }
 0x312   :  { %v3350_v28 = vpop.eup %3349 }
 0x313   :  { %v1123_v30 = vadd.f32 1.0, %v3350_v28 }
 0x314   :  { %v3352_v54 = vpop.eup %3351 }
 0x315   :  { %v3354_v24 = vpop.eup %3353  ;;  %v1086_v6 = vmul.f32 %v3352_v54, %v1084_v34  ;;  %3355 = vrcp.f32 %v1123_v30  ;;  %vm1091_vm4 = vweird.f32 %v3352_v54  ;;  %vm1129_vm13 = vweird.f32 %v1123_v30 }
 0x316   :  { %v1105_v17 = vmul.f32 %v3354_v24, %v1103_v22  ;;  %3357 = vtanh.f32 %v1079_v55  ;;  %vm1110_vm5 = vweird.f32 %v3354_v24  ;;  %vm1092_vm8 = vmor %vm1090_vm6, %vm1091_vm4 }
 0x317   :  { %v1087_v36 = vsub.f32 1.0, %v1086_v6  ;;  %vm1111_vm9 = vmor %vm1109_vm7, %vm1110_vm5 }
 0x318   :  { %v1106_v31 = vsub.f32 1.0, %v1105_v17 }
 0x319   :  { %v1088_v25 = vmul.f32 %v3352_v54, %v1087_v36 }
 0x31a   :  { %v1107_v2 = vmul.f32 %v3354_v24, %v1106_v31  ;;  %v1135_v31 = vand.u32 2147483648, %v1123_v30 }
 0x31b   :  { %v3356_v61 = vpop.eup %3355  ;;  %v1089_v11 = vadd.f32 %v3352_v54, %v1088_v25 }
 0x31c   :  { %v1108_v18 = vadd.f32 %v3354_v24, %v1107_v2  ;;  %v1125_v16 = vmul.f32 %v3356_v61, %v1123_v30  ;;  %v3358_v43 = vpop.eup %3357  ;;  %vm1130_vm12 = vweird.f32 %v3356_v61  ;;  %v1136_v45 = vor.u32 1.1754944e-38, %v1135_v31 }
 0x31d   :  { %v1093_v56 = vsel %vm1092_vm8, %v3352_v54, %v1089_v11  ;;  %v1133_v54 = vand.u32 2147483647, %v1123_v30  ;;  %vm1131_vm14 = vmor %vm1129_vm13, %vm1130_vm12  ;;  %v4241_v11 = vld [vmem:[#allocation29_spill] sm:$0xff] }
 0x31e   :  { %v1098_v28 = vsel %vm1095_vm10, %v1097_v40, %v1093_v56  ;;  %v1112_v58 = vsel %vm1111_vm9, %v3354_v24, %v1108_v18  ;;  %v1126_v27 = vsub.f32 1.0, %v1125_v16 }
 0x31f   :  { %v1117_v55 = vsel %vm1114_vm11, %v1116_v62, %v1112_v58  ;;  %v1140_v6 = vmul.f32 %v3358_v43, %v1098_v28  ;;  %vm1134_vm15 = vcmp.eq.f32.partialorder %v1133_v54, 8.507059e+37  ;;  %v4242_v43 = vld [vmem:[#allocation32_spill] sm:$0xff] }
 0x320   :  { %v1139_v17 = vmul.f32 %v1117_v55, %v4008_v4  ;;  %v1127_v36 = vmul.f32 %v3356_v61, %v1126_v27 }
 0x322   :  { %v4052_v34 = vadd.f32 %v1140_v6, %v1139_v17  ;;  %v1128_v22 = vadd.f32 %v3356_v61, %v1127_v36 }
 0x324   :  { %3359 = vtanh.f32 %v4052_v34  ;;  %v1132_v42 = vsel %vm1131_vm14, %v3356_v61, %v1128_v22 }
 0x325   :  { %v1137_v25 = vsel %vm1134_vm15, %v1136_v45, %v1132_v42 }
 0x32a   :  { %v3360_v24 = vpop.eup %3359 }
 0x32b   :  { %v1143_v10 = vmul.f32 %v3360_v24, %v1137_v25  ;;  %v4243_v25 = vld [vmem:[#allocation30_spill] sm:$0xff] }
 0x32d   :  { %v1144_v2 = vpack.c.bf16 %v1143_v10, %v1143_v10 }
 0x32f   :  { %1153 = vmatmul.bf16.vlgmr.msrb.gmra.mxu0 %v1144_v2  ;;  %1166 = vmatmul.bf16.vlgmr.msrb.gmra.mxu1 %v1144_v2 }
 0x330   :  { %1179 = vmatmul.bf16.vlgmr.msrb.gmra.mxu2 %v1144_v2  ;;  %1192 = vmatmul.bf16.vlgmr.msrb.gmra.mxu3 %v1144_v2 }
 0x331   :  { %1385 = vmatpush.bf16.msrb.mxu0 %v3678_v38  ;;  %1398 = vmatpush.bf16.msrb.mxu1 %v3680_v41 }
 0x332   :  { %1411 = vmatpush.bf16.msrb.mxu2 %v3682_v47  ;;  %1424 = vmatpush.bf16.msrb.mxu3 %v3685_v48 }
 0x335   :  { %1386 = vmatpush.bf16.msrb.mxu0 %v3687_v49  ;;  %1399 = vmatpush.bf16.msrb.mxu1 %v3690_v51 }
 0x336   :  { %1412 = vmatpush.bf16.msrb.mxu2 %v3699_v63  ;;  %1425 = vmatpush.bf16.msrb.mxu3 %v3695_v59 }
 0x339   :  { %1387 = vmatpush.bf16.msrb.mxu0 %v3697_v60  ;;  %1400 = vmatpush.bf16.msrb.mxu1 %v3702_v0 }
 0x33a   :  { %1413 = vmatpush.bf16.msrb.mxu2 %v3705_v7  ;;  %1426 = vmatpush.bf16.msrb.mxu3 %v3709_v8 }
 0x33d   :  { %1388 = vmatpush.bf16.msrb.mxu0 %v3711_v9  ;;  %1401 = vmatpush.bf16.msrb.mxu1 %v3714_v13 }
 0x33e   :  { %1414 = vmatpush.bf16.msrb.mxu2 %v3717_v19  ;;  %1427 = vmatpush.bf16.msrb.mxu3 %v3721_v20 }
 0x341   :  { %1389 = vmatpush.bf16.msrb.mxu0 %v3723_v21  ;;  %1402 = vmatpush.bf16.msrb.mxu1 %v3726_v23 }
 0x342   :  { %1415 = vmatpush.bf16.msrb.mxu2 %v3734_v29  ;;  %1428 = vmatpush.bf16.msrb.mxu3 %v3731_v26 }
 0x345   :  { %1390 = vmatpush.bf16.msrb.mxu0 %v3737_v33  ;;  %1403 = vmatpush.bf16.msrb.mxu1 %v3740_v37 }
 0x346   :  { %1416 = vmatpush.bf16.msrb.mxu2 %v3742_v39  ;;  %1429 = vmatpush.bf16.msrb.mxu3 %v3745_v44 }
 0x349   :  { %1391 = vmatpush.bf16.msrb.mxu0 %v3748_v52  ;;  %1404 = vmatpush.bf16.msrb.mxu1 %v3750_v53 }
 0x34a   :  { %1417 = vmatpush.bf16.msrb.mxu2 %v3754_v57  ;;  %1430 = vmatpush.bf16.msrb.mxu3 %v3756_v1 }
 0x34d   :  { %1392 = vmatpush.bf16.msrb.mxu0 %v3759_v5  ;;  %1405 = vmatpush.bf16.msrb.mxu1 %v3762_v12 }
 0x34e   :  { %1418 = vmatpush.bf16.msrb.mxu2 %v3766_v14  ;;  %1431 = vmatpush.bf16.msrb.mxu3 %v3768_v15 }
 0x3ac   :  { %v1154_v4 = vpop.f32.mrf.mxu0  ;;  %v1167_v30 = vpop.f32.mrf.mxu1 }
 0x3ad   :  { %v1197_v61 = vadd.f32 %v1154_v4, %v4240_v3  ;;  %v1198_v40 = vadd.f32 %v1167_v30, %v4241_v11 }
 0x3af   :  { %v2801_v18 = vmul.f32 -1.442695, %v1197_v61  ;;  %v2802_v16 = vmul.f32 -1.442695, %v1198_v40 }
 0x3b1   :  { %3361 = vpow2.f32 %v2801_v18 }
 0x3b2   :  { %3363 = vpow2.f32 %v2802_v16 }
 0x3b3   :  { %v1180_v62 = vpop.f32.mrf.mxu2  ;;  %v1193_v56 = vpop.f32.mrf.mxu3 }
 0x3b4   :  { %v1200_v28 = vadd.f32 %v1193_v56, %v4242_v43  ;;  %v1156_v58 = vpop.f32.mrf.mxu0  ;;  %v1169_v27 = vpop.f32.mrf.mxu1  ;;  %v1199_v10 = vadd.f32 %v1180_v62, %v4243_v25 }
 0x3b6   :  { %v2803_v55 = vmul.f32 -1.442695, %v1200_v28 }
 0x3b7   :  { %v3362_v6 = vpop.eup %3361 }
 0x3b8   :  { %v3364_v17 = vpop.eup %3363  ;;  %v1204_v36 = vadd.f32 1.0, %v3362_v6  ;;  %3365 = vpow2.f32 %v2803_v55 }
 0x3b9   :  { %v1223_v22 = vadd.f32 1.0, %v3364_v17 }
 0x3ba   :  { %3367 = vrcp.f32 %v1204_v36  ;;  %v1216_v11 = vand.u32 2147483648, %v1204_v36  ;;  %v1214_v16 = vand.u32 2147483647, %v1204_v36  ;;  %vm1210_vm2 = vweird.f32 %v1204_v36 }
 0x3bb   :  { %3369 = vrcp.f32 %v1223_v22  ;;  %v1182_v31 = vpop.f32.mrf.mxu2  ;;  %v1195_v54 = vpop.f32.mrf.mxu3  ;;  %v1235_v40 = vand.u32 2147483648, %v1223_v22  ;;  %v1233_v43 = vand.u32 2147483647, %v1223_v22  ;;  %vm1229_vm3 = vweird.f32 %v1223_v22 }
 0x3bc   :  { %v1217_v62 = vor.u32 1.1754944e-38, %v1216_v11  ;;  %vm1215_vm6 = vcmp.eq.f32.partialorder %v1214_v16, 8.507059e+37 }
 0x3bd   :  { %v1236_v6 = vor.u32 1.1754944e-38, %v1235_v40  ;;  %vm1234_vm7 = vcmp.eq.f32.partialorder %v1233_v43, 8.507059e+37 }
 0x3be   :  { %v3366_v42 = vpop.eup %3365 }
 0x3bf   :  { %v1243_v45 = vadd.f32 1.0, %v3366_v42 }
 0x3c0   :  { %v3368_v24 = vpop.eup %3367 }
 0x3c1   :  { %v3370_v2 = vpop.eup %3369  ;;  %v1206_v4 = vmul.f32 %v3368_v24, %v1204_v36  ;;  %3371 = vrcp.f32 %v1243_v45  ;;  %vm1211_vm0 = vweird.f32 %v3368_v24  ;;  %vm1249_vm9 = vweird.f32 %v1243_v45 }
 0x3c2   :  { %v1225_v30 = vmul.f32 %v3370_v2, %v1223_v22  ;;  %3373 = vtanh.f32 %v1199_v10  ;;  %vm1230_vm1 = vweird.f32 %v3370_v2  ;;  %vm1212_vm4 = vmor %vm1210_vm2, %vm1211_vm0 }
 0x3c3   :  { %v1207_v3 = vsub.f32 1.0, %v1206_v4  ;;  %vm1231_vm5 = vmor %vm1229_vm3, %vm1230_vm1 }
 0x3c4   :  { %v1226_v61 = vsub.f32 1.0, %v1225_v30 }
 0x3c5   :  { %v1208_v18 = vmul.f32 %v3368_v24, %v1207_v3 }
 0x3c6   :  { %v1227_v56 = vmul.f32 %v3370_v2, %v1226_v61  ;;  %v1255_v61 = vand.u32 2147483648, %v1243_v45 }
 0x3c7   :  { %v3372_v28 = vpop.eup %3371  ;;  %v1209_v58 = vadd.f32 %v3368_v24, %v1208_v18 }
 0x3c8   :  { %v1228_v27 = vadd.f32 %v3370_v2, %v1227_v56  ;;  %v1245_v55 = vmul.f32 %v3372_v28, %v1243_v45  ;;  %v3374_v31 = vpop.eup %3373  ;;  %vm1250_vm8 = vweird.f32 %v3372_v28  ;;  %v1256_v40 = vor.u32 1.1754944e-38, %v1255_v61 }
 0x3c9   :  { %v1213_v17 = vsel %vm1212_vm4, %v3368_v24, %v1209_v58  ;;  %v1253_v24 = vand.u32 2147483647, %v1243_v45  ;;  %vm1251_vm10 = vmor %vm1249_vm9, %vm1250_vm8 }
 0x3ca   :  { %v1218_v54 = vsel %vm1215_vm6, %v1217_v62, %v1213_v17  ;;  %v1232_v42 = vsel %vm1231_vm5, %v3370_v2, %v1228_v27  ;;  %v1246_v25 = vsub.f32 1.0, %v1245_v55 }
 0x3cb   :  { %v1237_v10 = vsel %vm1234_vm7, %v1236_v6, %v1232_v42  ;;  %v1260_v4 = vmul.f32 %v3374_v31, %v1218_v54  ;;  %vm1254_vm11 = vcmp.eq.f32.partialorder %v1253_v24, 8.507059e+37 }
 0x3cc   :  { %v1259_v30 = vmul.f32 %v1237_v10, %v4052_v34  ;;  %v1247_v3 = vmul.f32 %v3372_v28, %v1246_v25 }
 0x3ce   :  { %v4092_v36 = vadd.f32 %v1260_v4, %v1259_v30  ;;  %v1248_v22 = vadd.f32 %v3372_v28, %v1247_v3 }
 0x3d0   :  { %3375 = vtanh.f32 %v4092_v36  ;;  %v1252_v11 = vsel %vm1251_vm10, %v3372_v28, %v1248_v22 }
 0x3d1   :  { %v1257_v18 = vsel %vm1254_vm11, %v1256_v40, %v1252_v11 }
 0x3d6   :  { %v3376_v2 = vpop.eup %3375 }
 0x3d7   :  { %v1263_v16 = vmul.f32 %v3376_v2, %v1257_v18 }
 0x3d9   :  { %v1264_v56 = vpack.c.bf16 %v1263_v16, %v1263_v16 }
 0x3db   :  { %1273 = vmatmul.bf16.vlgmr.msra.gmra.mxu0 %v1264_v56  ;;  %1286 = vmatmul.bf16.vlgmr.msra.gmra.mxu1 %v1264_v56 }
 0x3dc   :  { %1299 = vmatmul.bf16.vlgmr.msra.gmra.mxu2 %v1264_v56  ;;  %1312 = vmatmul.bf16.vlgmr.msra.gmra.mxu3 %v1264_v56 }
 0x3dd   :  { %1505 = vmatpush.bf16.msra.mxu0 %v3678_v38  ;;  %1518 = vmatpush.bf16.msra.mxu1 %v3680_v41  ;;  %v4244_v38 = vld [vmem:[#allocation31_spill] sm:$0xff] }
 0x3de   :  { %1531 = vmatpush.bf16.msra.mxu2 %v3682_v47  ;;  %1544 = vmatpush.bf16.msra.mxu3 %v3685_v48  ;;  %v379_v41 = vadd.f32 %v4244_v38, %v3844_v32  ;;  %v4245_v47 = vld [vmem:[#allocation33_spill] sm:$0xff] }
 0x3df   :  { %v408_v48 = vadd.f32 %v4245_v47, %v3848_v35 }
 0x3e1   :  { %1506 = vmatpush.bf16.msra.mxu0 %v3687_v49  ;;  %1519 = vmatpush.bf16.msra.mxu1 %v3690_v51 }
 0x3e2   :  { %1532 = vmatpush.bf16.msra.mxu2 %v3699_v63  ;;  %1545 = vmatpush.bf16.msra.mxu3 %v3695_v59 }
 0x3e5   :  { %1507 = vmatpush.bf16.msra.mxu0 %v3697_v60  ;;  %1520 = vmatpush.bf16.msra.mxu1 %v3702_v0 }
 0x3e6   :  { %1533 = vmatpush.bf16.msra.mxu2 %v3705_v7  ;;  %1546 = vmatpush.bf16.msra.mxu3 %v3709_v8  ;;  %v4246_v7 = vld [vmem:[#allocation35_spill] sm:$0xff] }
 0x3e7   :  { %v466_v8 = vadd.f32 %v4246_v7, %v3860_v50 }
 0x3e9   :  { %1508 = vmatpush.bf16.msra.mxu0 %v3711_v9  ;;  %1521 = vmatpush.bf16.msra.mxu1 %v3714_v13 }
 0x3ea   :  { %1534 = vmatpush.bf16.msra.mxu2 %v3717_v19  ;;  %1547 = vmatpush.bf16.msra.mxu3 %v3721_v20 }
 0x3ed   :  { %1509 = vmatpush.bf16.msra.mxu0 %v3723_v21  ;;  %1522 = vmatpush.bf16.msra.mxu1 %v3726_v23 }
 0x3ee   :  { %1535 = vmatpush.bf16.msra.mxu2 %v3734_v29  ;;  %1548 = vmatpush.bf16.msra.mxu3 %v3731_v26 }
 0x3f1   :  { %1510 = vmatpush.bf16.msra.mxu0 %v3737_v33  ;;  %1523 = vmatpush.bf16.msra.mxu1 %v3740_v37 }
 0x3f2   :  { %1536 = vmatpush.bf16.msra.mxu2 %v3742_v39  ;;  %1549 = vmatpush.bf16.msra.mxu3 %v3745_v44 }
 0x3f5   :  { %1511 = vmatpush.bf16.msra.mxu0 %v3748_v52  ;;  %1524 = vmatpush.bf16.msra.mxu1 %v3750_v53  ;;  %v4247_v53 = vld [vmem:[#allocation34_spill] sm:$0xff] }
 0x3f6   :  { %1537 = vmatpush.bf16.msra.mxu2 %v3754_v57  ;;  %1550 = vmatpush.bf16.msra.mxu3 %v3756_v1  ;;  %v437_v57 = vadd.f32 %v4247_v53, %v3858_v46 }
 0x3f9   :  { %1512 = vmatpush.bf16.msra.mxu0 %v3759_v5  ;;  %1525 = vmatpush.bf16.msra.mxu1 %v3762_v12 }
 0x3fa   :  { %1538 = vmatpush.bf16.msra.mxu2 %v3766_v14  ;;  %1551 = vmatpush.bf16.msra.mxu3 %v3768_v15 }
 0x458   :  { %v1274_v49 = vpop.f32.mrf.mxu0  ;;  %v1287_v51 = vpop.f32.mrf.mxu1 }
 0x459   :  { %v1317_v59 = vadd.f32 %v1274_v49, %v379_v41  ;;  %v1318_v60 = vadd.f32 %v1287_v51, %v408_v48  ;;  %v4248_v51 = vld [vmem:[#allocation36_spill] sm:$0xff] }
 0x45b   :  { %v2804_v63 = vmul.f32 -1.442695, %v1317_v59  ;;  %v2805_v0 = vmul.f32 -1.442695, %v1318_v60  ;;  %v4249_v60 = vld [vmem:[#allocation37_spill] sm:$0xff] }
 0x45d   :  { %3377 = vpow2.f32 %v2804_v63 }
 0x45e   :  { %3379 = vpow2.f32 %v2805_v0 }
 0x45f   :  { %v1300_v9 = vpop.f32.mrf.mxu2  ;;  %v1313_v13 = vpop.f32.mrf.mxu3 }
 0x460   :  { %v1320_v19 = vadd.f32 %v1313_v13, %v466_v8  ;;  %v1276_v20 = vpop.f32.mrf.mxu0  ;;  %v1289_v21 = vpop.f32.mrf.mxu1  ;;  %v1319_v12 = vadd.f32 %v1300_v9, %v437_v57  ;;  %v4250_v13 = vld [vmem:[#allocation40_spill] sm:$0xff] }
 0x462   :  { %v2806_v23 = vmul.f32 -1.442695, %v1320_v19 }
 0x463   :  { %v3378_v26 = vpop.eup %3377 }
 0x464   :  { %v3380_v29 = vpop.eup %3379  ;;  %v1324_v33 = vadd.f32 1.0, %v3378_v26  ;;  %3381 = vpow2.f32 %v2806_v23 }
 0x465   :  { %v1343_v37 = vadd.f32 1.0, %v3380_v29 }
 0x466   :  { %3383 = vrcp.f32 %v1324_v33  ;;  %v1336_v45 = vand.u32 2147483648, %v1324_v33  ;;  %v1334_v58 = vand.u32 2147483647, %v1324_v33  ;;  %vm1330_vm14 = vweird.f32 %v1324_v33 }
 0x467   :  { %3385 = vrcp.f32 %v1343_v37  ;;  %v1302_v39 = vpop.f32.mrf.mxu2  ;;  %v1315_v44 = vpop.f32.mrf.mxu3  ;;  %v1355_v43 = vand.u32 2147483648, %v1343_v37  ;;  %v1353_v27 = vand.u32 2147483647, %v1343_v37  ;;  %vm1349_vm15 = vweird.f32 %v1343_v37 }
 0x468   :  { %v1337_v6 = vor.u32 1.1754944e-38, %v1336_v45  ;;  %vm1335_vm2 = vcmp.eq.f32.partialorder %v1334_v58, 8.507059e+37 }
 0x469   :  { %v1356_v54 = vor.u32 1.1754944e-38, %v1355_v43  ;;  %vm1354_vm3 = vcmp.eq.f32.partialorder %v1353_v27, 8.507059e+37 }
 0x46a   :  { %v3382_v52 = vpop.eup %3381 }
 0x46b   :  { %v1363_v1 = vadd.f32 1.0, %v3382_v52 }
 0x46c   :  { %v3384_v5 = vpop.eup %3383 }
 0x46d   :  { %v3386_v14 = vpop.eup %3385  ;;  %v1326_v15 = vmul.f32 %v3384_v5, %v1324_v33  ;;  %3387 = vrcp.f32 %v1363_v1  ;;  %vm1331_vm12 = vweird.f32 %v3384_v5  ;;  %v1375_v2 = vand.u32 2147483648, %v1363_v1 }
 0x46e   :  { %v1345_v35 = vmul.f32 %v3386_v14, %v1343_v37  ;;  %3389 = vtanh.f32 %v1319_v12  ;;  %vm1350_vm13 = vweird.f32 %v3386_v14  ;;  %vm1332_vm0 = vmor %vm1330_vm14, %vm1331_vm12  ;;  %vm1369_vm5 = vweird.f32 %v1363_v1 }
 0x46f   :  { %v1327_v50 = vsub.f32 1.0, %v1326_v15  ;;  %vm1351_vm1 = vmor %vm1349_vm15, %vm1350_vm13  ;;  %v1373_v18 = vand.u32 2147483647, %v1363_v1  ;;  %v1376_v56 = vor.u32 1.1754944e-38, %v1375_v2 }
 0x470   :  { %v1346_v34 = vsub.f32 1.0, %v1345_v35 }
 0x471   :  { %v1328_v28 = vmul.f32 %v3384_v5, %v1327_v50  ;;  %vm1374_vm7 = vcmp.eq.f32.partialorder %v1373_v18, 8.507059e+37 }
 0x472   :  { %v1347_v62 = vmul.f32 %v3386_v14, %v1346_v34 }
 0x473   :  { %v3388_v55 = vpop.eup %3387  ;;  %v1329_v46 = vadd.f32 %v3384_v5, %v1328_v28 }
 0x474   :  { %v1348_v17 = vadd.f32 %v3386_v14, %v1347_v62  ;;  %v1365_v31 = vmul.f32 %v3388_v55, %v1363_v1  ;;  %v3390_v25 = vpop.eup %3389  ;;  %vm1370_vm4 = vweird.f32 %v3388_v55  ;;  %v4251_v1 = vld [vmem:[#allocation38_spill] sm:$0xff] }
 0x475   :  { %v1333_v42 = vsel %vm1332_vm0, %v3384_v5, %v1329_v46  ;;  %vm1371_vm6 = vmor %vm1369_vm5, %vm1370_vm4 }
 0x476   :  { %v1338_v10 = vsel %vm1335_vm2, %v1337_v6, %v1333_v42  ;;  %v1352_v4 = vsel %vm1351_vm1, %v3386_v14, %v1348_v17  ;;  %v1366_v30 = vsub.f32 1.0, %v1365_v31 }
 0x477   :  { %v1357_v3 = vsel %vm1354_vm3, %v1356_v54, %v1352_v4  ;;  %v1380_v22 = vmul.f32 %v3390_v25, %v1338_v10 }
 0x478   :  { %v1379_v61 = vmul.f32 %v1357_v3, %v4092_v36  ;;  %v1367_v24 = vmul.f32 %v3388_v55, %v1366_v30 }
 0x47a   :  { %v4136_v11 = vadd.f32 %v1380_v22, %v1379_v61  ;;  %v1368_v40 = vadd.f32 %v3388_v55, %v1367_v24 }
 0x47c   :  { %3391 = vtanh.f32 %v4136_v11  ;;  %v1372_v16 = vsel %vm1371_vm6, %v3388_v55, %v1368_v40 }
 0x47d   :  { %v1377_v41 = vsel %vm1374_vm7, %v1376_v56, %v1372_v16 }
 0x482   :  { %v3392_v38 = vpop.eup %3391 }
 0x483   :  { %v1383_v47 = vmul.f32 %v3392_v38, %v1377_v41 }
 0x485   :  { %v1384_v48 = vpack.c.bf16 %v1383_v47, %v1383_v47 }
 0x487   :  { %1393 = vmatmul.bf16.vlgmr.msrb.gmra.mxu0 %v1384_v48  ;;  %1406 = vmatmul.bf16.vlgmr.msrb.gmra.mxu1 %v1384_v48 }
 0x488   :  { %1419 = vmatmul.bf16.vlgmr.msrb.gmra.mxu2 %v1384_v48  ;;  %1432 = vmatmul.bf16.vlgmr.msrb.gmra.mxu3 %v1384_v48 }
 0x504   :  { %v1394_v36 = vpop.f32.mrf.mxu0  ;;  %v1407_v49 = vpop.f32.mrf.mxu1 }
 0x505   :  { %v1437_v59 = vadd.f32 %v1394_v36, %v4248_v51  ;;  %v1438_v63 = vadd.f32 %v1407_v49, %v4249_v60  ;;  %v3210_v36 = vld [vmem:[#allocation10 + $0x30] sm:$0xff]  ;;  %v3209_v49 = vld [vmem:[#allocation10 + $0x28] sm:$0xff]  ;;  %v3208_v51 = vld [vmem:[#allocation10 + $0x20] sm:$0xff] }
 0x507   :  { %v2807_v0 = vmul.f32 -1.442695, %v1437_v59  ;;  %v2808_v7 = vmul.f32 -1.442695, %v1438_v63  ;;  %v4252_v59 = vld [vmem:[#allocation39_spill] sm:$0xff]  ;;  %v3207_v63 = vld [vmem:[#allocation10 + $0x18] sm:$0xff] }
 0x508   :  { %v384_v60 = vadd.f32 %v4252_v59, %v3844_v32  ;;  %v3223_v59 = vld [vmem:[#allocation11 + $0x58] sm:$0xff] }
 0x509   :  { %3393 = vpow2.f32 %v2807_v0 }
 0x50a   :  { %3395 = vpow2.f32 %v2808_v7 }
 0x50b   :  { %v1420_v8 = vpop.f32.mrf.mxu2  ;;  %v1433_v9 = vpop.f32.mrf.mxu3 }
 0x50c   :  { %v1440_v19 = vadd.f32 %v1433_v9, %v4250_v13  ;;  %v1396_v20 = vpop.f32.mrf.mxu0  ;;  %v1409_v21 = vpop.f32.mrf.mxu1  ;;  %v1439_v5 = vadd.f32 %v1420_v8, %v4251_v1  ;;  %v4253_v9 = vld [vmem:[#allocation41_spill] sm:$0xff] }
 0x50d   :  { %v3206_v21 = vld [vmem:[#allocation10 + $0x10] sm:$0xff] }
 0x50e   :  { %v2809_v23 = vmul.f32 -1.442695, %v1440_v19 }
 0x50f   :  { %v3394_v26 = vpop.eup %3393 }
 0x510   :  { %v3396_v29 = vpop.eup %3395  ;;  %v1444_v33 = vadd.f32 1.0, %v3394_v26  ;;  %3397 = vpow2.f32 %v2809_v23  ;;  %v3205_v23 = vld [vmem:[#allocation10 + $0x8] sm:$0xff] }
 0x511   :  { %v1463_v37 = vadd.f32 1.0, %v3396_v29 }
 0x512   :  { %3399 = vrcp.f32 %v1444_v33  ;;  %v1456_v34 = vand.u32 2147483648, %v1444_v33  ;;  %v1454_v28 = vand.u32 2147483647, %v1444_v33  ;;  %vm1450_vm10 = vweird.f32 %v1444_v33 }
 0x513   :  { %3401 = vrcp.f32 %v1463_v37  ;;  %v1422_v39 = vpop.f32.mrf.mxu2  ;;  %v1435_v44 = vpop.f32.mrf.mxu3  ;;  %v1475_v45 = vand.u32 2147483648, %v1463_v37  ;;  %v1473_v62 = vand.u32 2147483647, %v1463_v37  ;;  %vm1469_vm11 = vweird.f32 %v1463_v37 }
 0x514   :  { %v1457_v46 = vor.u32 1.1754944e-38, %v1456_v34  ;;  %vm1455_vm14 = vcmp.eq.f32.partialorder %v1454_v28, 8.507059e+37  ;;  %v3204_v44 = vld [vmem:[#allocation10] sm:$0xff]  ;;  %v3218_v34 = vld [vmem:[#allocation11 + $0x30] sm:$0xff] }
 0x515   :  { %v1476_v31 = vor.u32 1.1754944e-38, %v1475_v45  ;;  %vm1474_vm15 = vcmp.eq.f32.partialorder %v1473_v62, 8.507059e+37  ;;  %v3226_v45 = vld [vmem:[#allocation11 + $0x70] sm:$0xff] }
 0x516   :  { %v3398_v52 = vpop.eup %3397  ;;  %v3234_v28 = vld [vmem:[#allocation11 + $0xb0] sm:$0xff] }
 0x517   :  { %v1483_v53 = vadd.f32 1.0, %v3398_v52 }
 0x518   :  { %v3400_v57 = vpop.eup %3399 }
 0x519   :  { %v3402_v12 = vpop.eup %3401  ;;  %v1446_v14 = vmul.f32 %v3400_v57, %v1444_v33  ;;  %3403 = vrcp.f32 %v1483_v53  ;;  %vm1451_vm8 = vweird.f32 %v3400_v57  ;;  %v1495_v2 = vand.u32 2147483648, %v1483_v53  ;;  %v4254_v33 = vld [vmem:[#allocation43_spill] sm:$0xff] }
 0x51a   :  { %v1465_v15 = vmul.f32 %v3402_v12, %v1463_v37  ;;  %3405 = vtanh.f32 %v1439_v5  ;;  %vm1470_vm9 = vweird.f32 %v3402_v12  ;;  %vm1452_vm12 = vmor %vm1450_vm10, %vm1451_vm8  ;;  %vm1489_vm1 = vweird.f32 %v1483_v53 }
 0x51b   :  { %v1447_v35 = vsub.f32 1.0, %v1446_v14  ;;  %vm1471_vm13 = vmor %vm1469_vm11, %vm1470_vm9  ;;  %v1493_v18 = vand.u32 2147483647, %v1483_v53  ;;  %v1496_v56 = vor.u32 1.1754944e-38, %v1495_v2 }
 0x51c   :  { %v1466_v50 = vsub.f32 1.0, %v1465_v15  ;;  %v3219_v15 = vld [vmem:[#allocation11 + $0x38] sm:$0xff] }
 0x51d   :  { %v1448_v43 = vmul.f32 %v3400_v57, %v1447_v35  ;;  %vm1494_vm3 = vcmp.eq.f32.partialorder %v1493_v18, 8.507059e+37  ;;  %v3227_v35 = vld [vmem:[#allocation11 + $0x78] sm:$0xff]  ;;  %1772 = vmatpush.bf16.msrb.mxu1 %v3219_v15  ;;  %v3220_v15 = vld [vmem:[#allocation11 + $0x40] sm:$0xff] }
 0x51e   :  { %v1467_v58 = vmul.f32 %v3402_v12, %v1466_v50  ;;  %v3235_v50 = vld [vmem:[#allocation11 + $0xb8] sm:$0xff]  ;;  %1851 = vmatpush.bf16.msrb.mxu2 %v3227_v35  ;;  %v3228_v35 = vld [vmem:[#allocation11 + $0x80] sm:$0xff] }
 0x51f   :  { %v3404_v27 = vpop.eup %3403  ;;  %v1449_v55 = vadd.f32 %v3400_v57, %v1448_v43  ;;  %1930 = vmatpush.bf16.msrb.mxu3 %v3235_v50  ;;  %v3296_v50 = vld [vmem:[%s4202_s5] ss:$0 sm:$0xff] }
 0x520   :  { %v1468_v6 = vadd.f32 %v3402_v12, %v1467_v58  ;;  %v1485_v17 = vmul.f32 %v3404_v27, %v1483_v53  ;;  %v3406_v42 = vpop.eup %3405  ;;  %vm1490_vm0 = vweird.f32 %v3404_v27 }
 0x521   :  { %v1453_v54 = vsel %vm1452_vm12, %v3400_v57, %v1449_v55  ;;  %vm1491_vm2 = vmor %vm1489_vm1, %vm1490_vm0  ;;  %1773 = vmatpush.bf16.msrb.mxu1 %v3218_v34  ;;  %vm1947_vm0 = vcmask 1043456   ;;  %vm1952_vm1 = vcmask 195584  }
 0x522   :  { %v1458_v25 = vsel %vm1455_vm14, %v1457_v46, %v1453_v54  ;;  %v1472_v10 = vsel %vm1471_vm13, %v3402_v12, %v1468_v6  ;;  %v1486_v4 = vsub.f32 1.0, %v1485_v17  ;;  %1852 = vmatpush.bf16.msrb.mxu2 %v3226_v45  ;;  %v3217_v17 = vld [vmem:[#allocation11 + $0x28] sm:$0xff] }
 0x523   :  { %v1477_v30 = vsel %vm1474_vm15, %v1476_v31, %v1472_v10  ;;  %v1500_v3 = vmul.f32 %v3406_v42, %v1458_v25  ;;  %v3225_v31 = vld [vmem:[#allocation11 + $0x68] sm:$0xff]  ;;  %1931 = vmatpush.bf16.msrb.mxu3 %v3234_v28 }
 0x524   :  { %v1499_v22 = vmul.f32 %v1477_v30, %v4136_v11  ;;  %v1487_v61 = vmul.f32 %v3404_v27, %v1486_v4  ;;  %v3211_v11 = vld [vmem:[#allocation10 + $0x38] sm:$0xff]  ;;  %v3233_v42 = vld [vmem:[#allocation11 + $0xa8] sm:$0xff] }
 0x525   :  { %1693 = vmatpush.bf16.msrb.mxu0 %v3211_v11  ;;  %1774 = vmatpush.bf16.msrb.mxu1 %v3217_v17  ;;  %v3241_v17 = vld [vmem:[#allocation11 + $0xe8] sm:$0xff] }
 0x526   :  { %v4144_v24 = vadd.f32 %v1500_v3, %v1499_v22  ;;  %v1488_v40 = vadd.f32 %v3404_v27, %v1487_v61  ;;  %1853 = vmatpush.bf16.msrb.mxu2 %v3225_v31  ;;  %v3216_v61 = vld [vmem:[#allocation11 + $0x20] sm:$0xff]  ;;  %v3249_v31 = vld [vmem:[#allocation11 + $0x128] sm:$0xff] }
 0x527   :  { %1932 = vmatpush.bf16.msrb.mxu3 %v3233_v42  ;;  %v3240_v42 = vld [vmem:[#allocation11 + $0xe0] sm:$0xff] }
 0x528   :  { %3407 = vtanh.f32 %v4144_v24  ;;  %v1492_v16 = vsel %vm1491_vm2, %v3404_v27, %v1488_v40  ;;  %v4255_v27 = vld [vmem:[#allocation42_spill] sm:$0xff] }
 0x529   :  { %v1497_v41 = vsel %vm1494_vm3, %v1496_v56, %v1492_v16  ;;  %1694 = vmatpush.bf16.msrb.mxu0 %v3210_v36  ;;  %v3224_v40 = vld [vmem:[#allocation11 + $0x60] sm:$0xff]  ;;  %1775 = vmatpush.bf16.msrb.mxu1 %v3216_v61  ;;  %v3238_v61 = vld [vmem:[#allocation11 + $0xd0] sm:$0xff] }
 0x52a   :  { %v3232_v16 = vld [vmem:[#allocation11 + $0xa0] sm:$0xff]  ;;  %1854 = vmatpush.bf16.msrb.mxu2 %v3224_v40  ;;  %v3246_v40 = vld [vmem:[#allocation11 + $0x110] sm:$0xff] }
 0x52b   :  { %1933 = vmatpush.bf16.msrb.mxu3 %v3232_v16 }
 0x52d   :  { %1695 = vmatpush.bf16.msrb.mxu0 %v3209_v49 }
 0x52e   :  { %v3408_v38 = vpop.eup %3407  ;;  %1855 = vmatpush.bf16.msrb.mxu2 %v3223_v59 }
 0x52f   :  { %v1503_v47 = vmul.f32 %v3408_v38, %v1497_v41 }
 0x531   :  { %v1504_v48 = vpack.c.bf16 %v1503_v47, %v1503_v47  ;;  %1696 = vmatpush.bf16.msrb.mxu0 %v3208_v51  ;;  %v3215_v51 = vld [vmem:[#allocation11 + $0x18] sm:$0xff] }
 0x532   :  { %1776 = vmatpush.bf16.msrb.mxu1 %v3215_v51 }
 0x533   :  { %1513 = vmatmul.bf16.vlgmr.msra.gmra.mxu0 %v1504_v48  ;;  %1526 = vmatmul.bf16.vlgmr.msra.gmra.mxu1 %v1504_v48 }
 0x534   :  { %1539 = vmatmul.bf16.vlgmr.msra.gmra.mxu2 %v1504_v48  ;;  %1552 = vmatmul.bf16.vlgmr.msra.gmra.mxu3 %v1504_v48 }
 0x535   :  { %1697 = vmatpush.bf16.msrb.mxu0 %v3207_v63 }
 0x539   :  { %1698 = vmatpush.bf16.msrb.mxu0 %v3206_v21  ;;  %v3214_v21 = vld [vmem:[#allocation11 + $0x10] sm:$0xff] }
 0x53a   :  { %1777 = vmatpush.bf16.msrb.mxu1 %v3214_v21 }
 0x53d   :  { %1699 = vmatpush.bf16.msrb.mxu0 %v3205_v23  ;;  %v3222_v23 = vld [vmem:[#allocation11 + $0x50] sm:$0xff] }
 0x53e   :  { %1856 = vmatpush.bf16.msrb.mxu2 %v3222_v23 }
 0x541   :  { %1700 = vmatpush.bf16.msrb.mxu0 %v3204_v44  ;;  %v3229_v44 = vld [vmem:[#allocation11 + $0x88] sm:$0xff] }
 0x5b0   :  { %v1514_v0 = vpop.f32.mrf.mxu0  ;;  %v1527_v7 = vpop.f32.mrf.mxu1 }
 0x5b1   :  { %v1557_v8 = vadd.f32 %v1514_v0, %v384_v60  ;;  %v1558_v13 = vadd.f32 %v1527_v7, %v4253_v9 }
 0x5b3   :  { %v2810_v19 = vmul.f32 -1.442695, %v1557_v8  ;;  %v2811_v20 = vmul.f32 -1.442695, %v1558_v13  ;;  %v3231_v8 = vld [vmem:[#allocation11 + $0x98] sm:$0xff] }
 0x5b4   :  { %1934 = vmatpush.bf16.msrb.mxu3 %v3231_v8  ;;  %v3236_v8 = vld [vmem:[#allocation11 + $0xc0] sm:$0xff] }
 0x5b5   :  { %3409 = vpow2.f32 %v2810_v19 }
 0x5b6   :  { %3411 = vpow2.f32 %v2811_v20 }
 0x5b7   :  { %v1540_v26 = vpop.f32.mrf.mxu2  ;;  %v1553_v29 = vpop.f32.mrf.mxu3 }
 0x5b8   :  { %v1560_v37 = vadd.f32 %v1553_v29, %v4254_v33  ;;  %v1516_v39 = vpop.f32.mrf.mxu0  ;;  %v1529_v32 = vpop.f32.mrf.mxu1  ;;  %v1559_v55 = vadd.f32 %v1540_v26, %v4255_v27  ;;  %v3230_v29 = vld [vmem:[#allocation11 + $0x90] sm:$0xff]  ;;  %v3259_v27 = vld [vmem:[#allocation11 + $0x178] sm:$0xff] }
 0x5b9   :  { %v3221_v32 = vld [vmem:[#allocation11 + $0x48] sm:$0xff]  ;;  %1935 = vmatpush.bf16.msrb.mxu3 %v3230_v29  ;;  %v3283_v29 = vld [vmem:[#allocation11 + $0x238] sm:$0xff] }
 0x5ba   :  { %v2812_v52 = vmul.f32 -1.442695, %v1560_v37  ;;  %1857 = vmatpush.bf16.msrb.mxu2 %v3221_v32  ;;  %v3272_v32 = vld [vmem:[#allocation11 + $0x1e0] sm:$0xff] }
 0x5bb   :  { %v3410_v53 = vpop.eup %3409 }
 0x5bc   :  { %v3412_v57 = vpop.eup %3411  ;;  %v1564_v1 = vadd.f32 1.0, %v3410_v53  ;;  %3413 = vpow2.f32 %v2812_v52 }
 0x5bd   :  { %v4151_v5 = vadd.f32 1.0, %v3412_v57  ;;  %1936 = vmatpush.bf16.msrb.mxu3 %v3229_v44  ;;  %v3280_v44 = vld [vmem:[#allocation11 + $0x220] sm:$0xff] }
 0x5be   :  { %3415 = vrcp.f32 %v1564_v1  ;;  %v1576_v4 = vand.u32 2147483648, %v1564_v1  ;;  %v1574_v22 = vand.u32 2147483647, %v1564_v1  ;;  %vm1570_vm6 = vweird.f32 %v1564_v1  ;;  %1858 = vmatpush.bf16.msrb.mxu2 %v3220_v15 }
 0x5bf   :  { %3417 = vrcp.f32 %v4151_v5  ;;  %v1542_v12 = vpop.f32.mrf.mxu2  ;;  %v1555_v14 = vpop.f32.mrf.mxu3  ;;  %v1595_v30 = vand.u32 2147483648, %v4151_v5  ;;  %v1593_v18 = vand.u32 2147483647, %v4151_v5  ;;  %vm1589_vm7 = vweird.f32 %v4151_v5 }
 0x5c0   :  { %v1577_v41 = vor.u32 1.1754944e-38, %v1576_v4  ;;  %vm1575_vm10 = vcmp.eq.f32.partialorder %v1574_v22, 8.507059e+37  ;;  %v3212_v14 = vld [vmem:[#allocation11] sm:$0xff]  ;;  %v3255_v22 = vld [vmem:[#allocation11 + $0x158] sm:$0xff] }
 0x5c1   :  { %v1596_v36 = vor.u32 1.1754944e-38, %v1595_v30  ;;  %vm1594_vm11 = vcmp.eq.f32.partialorder %v1593_v18, 8.507059e+37  ;;  %1937 = vmatpush.bf16.msrb.mxu3 %v3228_v35  ;;  %v3239_v30 = vld [vmem:[#allocation11 + $0xd8] sm:$0xff] }
 0x5c2   :  { %v3414_v43 = vpop.eup %3413 }
 0x5c3   :  { %v4154_v58 = vadd.f32 1.0, %v3414_v43 }
 0x5c4   :  { %v3416_v62 = vpop.eup %3415 }
 0x5c5   :  { %v3418_v46 = vpop.eup %3417  ;;  %v1566_v6 = vmul.f32 %v3416_v62, %v1564_v1  ;;  %3419 = vrcp.f32 %v4154_v58  ;;  %vm1571_vm4 = vweird.f32 %v3416_v62  ;;  %v1615_v37 = vand.u32 2147483648, %v4154_v58  ;;  %2197 = vmatpush.bf16.msra.mxu3 %v3259_v27  ;;  %v3267_v27 = vld [vmem:[#allocation11 + $0x1b8] sm:$0xff] }
 0x5c6   :  { %v1585_v54 = vmul.f32 %v3418_v46, %v4151_v5  ;;  %3421 = vtanh.f32 %v1559_v55  ;;  %vm1590_vm5 = vweird.f32 %v3418_v46  ;;  %vm1572_vm8 = vmor %vm1570_vm6, %vm1571_vm4  ;;  %vm1609_vm13 = vweird.f32 %v4154_v58  ;;  %v3242_v55 = vld [vmem:[#allocation11 + $0xf0] sm:$0xff] }
 0x5c7   :  { %v1567_v25 = vsub.f32 1.0, %v1566_v6  ;;  %vm4164_vm9 = vmor %vm1589_vm7, %vm1590_vm5  ;;  %v1613_v39 = vand.u32 2147483647, %v4154_v58  ;;  %v1616_v53 = vor.u32 1.1754944e-38, %v1615_v37  ;;  %v3258_v6 = vld [vmem:[#allocation11 + $0x170] sm:$0xff] }
 0x5c8   :  { %v1586_v10 = vsub.f32 1.0, %v1585_v54  ;;  %v3257_v54 = vld [vmem:[#allocation11 + $0x168] sm:$0xff]  ;;  %v3282_v37 = vld [vmem:[#allocation11 + $0x230] sm:$0xff] }
 0x5c9   :  { %v1568_v3 = vmul.f32 %v3416_v62, %v1567_v25  ;;  %vm1614_vm15 = vcmp.eq.f32.partialorder %v1613_v39, 8.507059e+37  ;;  %2198 = vmatpush.bf16.msra.mxu3 %v3258_v6  ;;  %v3248_v25 = vld [vmem:[#allocation11 + $0x120] sm:$0xff]  ;;  %v3273_v39 = vld [vmem:[#allocation11 + $0x1e8] sm:$0xff] }
 0x5ca   :  { %v1587_v2 = vmul.f32 %v3418_v46, %v1586_v10  ;;  %v3256_v10 = vld [vmem:[#allocation11 + $0x160] sm:$0xff] }
 0x5cb   :  { %v3420_v56 = vpop.eup %3419  ;;  %v1569_v38 = vadd.f32 %v3416_v62, %v1568_v3  ;;  %v3247_v3 = vld [vmem:[#allocation11 + $0x118] sm:$0xff] }
 0x5cc   :  { %v1588_v47 = vadd.f32 %v3418_v46, %v1587_v2  ;;  %v1605_v48 = vmul.f32 %v3420_v56, %v4154_v58  ;;  %v3422_v60 = vpop.eup %3421  ;;  %vm1610_vm12 = vweird.f32 %v3420_v56  ;;  %v3243_v58 = vld [vmem:[#allocation11 + $0xf8] sm:$0xff]  ;;  %v3254_v2 = vld [vmem:[#allocation11 + $0x150] sm:$0xff] }
 0x5cd   :  { %v1573_v49 = vsel %vm1572_vm8, %v3416_v62, %v1569_v38  ;;  %vm1611_vm14 = vmor %vm1609_vm13, %vm1610_vm12  ;;  %v3251_v62 = vld [vmem:[#allocation11 + $0x138] sm:$0xff]  ;;  %2199 = vmatpush.bf16.msra.mxu3 %v3257_v54  ;;  %v3264_v54 = vld [vmem:[#allocation11 + $0x1a0] sm:$0xff] }
 0x5ce   :  { %v1578_v63 = vsel %vm1575_vm10, %v1577_v41, %v1573_v49  ;;  %v1592_v0 = vsel %vm4164_vm9, %v3418_v46, %v1588_v47  ;;  %v1606_v7 = vsub.f32 1.0, %v1605_v48  ;;  %2118 = vmatpush.bf16.msra.mxu2 %v3251_v62  ;;  %v3250_v46 = vld [vmem:[#allocation11 + $0x130] sm:$0xff]  ;;  %v3237_v47 = vld [vmem:[#allocation11 + $0xc8] sm:$0xff] }
 0x5cf   :  { %v1597_v9 = vsel %vm1594_vm11, %v1596_v36, %v1592_v0  ;;  %v1620_v13 = vmul.f32 %v3422_v60, %v1578_v63  ;;  %v3245_v48 = vld [vmem:[#allocation11 + $0x108] sm:$0xff] }
 0x5d0   :  { %v1619_v19 = vmul.f32 %v1597_v9, %v4144_v24  ;;  %v1607_v20 = vmul.f32 %v3420_v56, %v1606_v7  ;;  %v3213_v24 = vld [vmem:[#allocation11 + $0x8] sm:$0xff]  ;;  %v4182_v7 = vld [vmem:[%s4204_s7] sm:$0xf]  ;;  %v3244_v9 = vld [vmem:[#allocation11 + $0x100] sm:$0xff]  ;;  %s3614_s7 = smov [#allocation13]  }
 0x5d1   :  { %1778 = vmatpush.bf16.msrb.mxu1 %v3213_v24  ;;  %2200 = vmatpush.bf16.msra.mxu3 %v3256_v10  ;;  %v3253_v36 = vld [vmem:[#allocation11 + $0x148] sm:$0xff]  ;;  %s2502_s14 = sshll.u32 %s3614_s7, 4  ;;  %s2503_s14 = int_to_ptr.vmem [resolvable:$true] %s2502_s14 }
 0x5d2   :  { %v1621_v26 = vadd.f32 %v1620_v13, %v1619_v19  ;;  %v1608_v33 = vadd.f32 %v3420_v56, %v1607_v20  ;;  %2119 = vmatpush.bf16.msra.mxu2 %v3250_v46  ;;  %v3252_v13 = vld [vmem:[#allocation11 + $0x140] sm:$0xff]  ;;  %v3281_v24 = vld [vmem:[#allocation11 + $0x228] sm:$0xff] }
 0x5d3   :  { %v3261_v10 = vld [vmem:[#allocation11 + $0x188] sm:$0xff] }
 0x5d4   :  { %3423 = vtanh.f32 %v1621_v26  ;;  %v1612_v52 = vsel %vm1611_vm14, %v3420_v56, %v1608_v33  ;;  %v3275_v26 = vld [vmem:[#allocation11 + $0x1f8] sm:$0xff]  ;;  %v3274_v33 = vld [vmem:[#allocation11 + $0x1f0] sm:$0xff] }
 0x5d5   :  { %v1617_v1 = vsel %vm1614_vm15, %v1616_v53, %v1612_v52  ;;  %1779 = vmatpush.bf16.msrb.mxu1 %v3212_v14  ;;  %2201 = vmatpush.bf16.msra.mxu3 %v3255_v22  ;;  %v3271_v53 = vld [vmem:[#allocation11 + $0x1d8] sm:$0xff] }
 0x5d6   :  { %2120 = vmatpush.bf16.msra.mxu2 %v3249_v31  ;;  %v3265_v31 = vld [vmem:[#allocation11 + $0x1a8] sm:$0xff] }
 0x5d9   :  { %2039 = vmatpush.bf16.msra.mxu1 %v3243_v58  ;;  %2202 = vmatpush.bf16.msra.mxu3 %v3254_v2 }
 0x5da   :  { %v3424_v57 = vpop.eup %3423  ;;  %2121 = vmatpush.bf16.msra.mxu2 %v3248_v25  ;;  %v3262_v25 = vld [vmem:[#allocation11 + $0x190] sm:$0xff] }
 0x5db   :  { %v1623_v5 = vmul.f32 %v3424_v57, %v1617_v1  ;;  %v3279_v57 = vld [vmem:[#allocation11 + $0x218] sm:$0xff]  ;;  %v3270_v1 = vld [vmem:[#allocation11 + $0x1d0] sm:$0xff] }
 0x5dd   :  { %v1624_v12 = vpack.c.bf16 %v1623_v5, %v1623_v5  ;;  %2040 = vmatpush.bf16.msra.mxu1 %v3242_v55  ;;  %2203 = vmatpush.bf16.msra.mxu3 %v3253_v36  ;;  %v3278_v5 = vld [vmem:[#allocation11 + $0x210] sm:$0xff] }
 0x5de   :  { %2122 = vmatpush.bf16.msra.mxu2 %v3247_v3  ;;  %v3276_v3 = vld [vmem:[#allocation11 + $0x200] sm:$0xff] }
 0x5df   :  { %1701 = vmatmul.bf16.vlgmr.msrb.gmra.mxu0 %v1624_v12 }
 0x5e1   :  { %2041 = vmatpush.bf16.msra.mxu1 %v3241_v17  ;;  %2204 = vmatpush.bf16.msra.mxu3 %v3252_v13  ;;  %v3266_v17 = vld [vmem:[#allocation11 + $0x1b0] sm:$0xff] }
 0x5e2   :  { %2123 = vmatpush.bf16.msra.mxu2 %v3246_v40 }
 0x5e5   :  { %2042 = vmatpush.bf16.msra.mxu1 %v3240_v42  ;;  %v3263_v42 = vld [vmem:[#allocation11 + $0x198] sm:$0xff] }
 0x5e6   :  { %2124 = vmatpush.bf16.msra.mxu2 %v3245_v48 }
 0x5e9   :  { %2043 = vmatpush.bf16.msra.mxu1 %v3239_v30  ;;  %v3268_v30 = vld [vmem:[#allocation11 + $0x1c0] sm:$0xff] }
 0x5ea   :  { %2125 = vmatpush.bf16.msra.mxu2 %v3244_v9 }
 0x5ed   :  { %2044 = vmatpush.bf16.msra.mxu1 %v3238_v61 }
 0x5f1   :  { %2045 = vmatpush.bf16.msra.mxu1 %v3237_v47 }
 0x5f5   :  { %2046 = vmatpush.bf16.msra.mxu1 %v3236_v8 }
 0x65c   :  { %v1702_v34 = vpop.f32.mrf.mxu0 }
 0x65d   :  { %v1703_v45 = vadd.f32 %v3296_v50, %v1702_v34  ;;  %v3269_v34 = vld [vmem:[#allocation11 + $0x1c8] sm:$0xff] }
 0x65f   :  { %v1707_v43 = vpack.c.bf16 %v1703_v45, %v1703_v45  ;;  %v3277_v45 = vld [vmem:[#allocation11 + $0x208] sm:$0xff] }
 0x661   :  { %1780 = vmatmul.bf16.vlgmr.msrb.gmra.mxu1 %v1707_v43  ;;  %1859 = vmatmul.bf16.vlgmr.msrb.gmra.mxu2 %v1707_v43 }
 0x662   :  { %1938 = vmatmul.bf16.vlgmr.msrb.gmra.mxu3 %v1707_v43  ;;  %2380 = vmatpush.bf16.msrb.mxu1 %v3275_v26 }
 0x663   :  { %2459 = vmatpush.bf16.msrb.mxu2 %v3283_v29 }
 0x664   :  { %v1704_v28 = vpop.f32.mrf.mxu0 }
 0x666   :  { %2381 = vmatpush.bf16.msrb.mxu1 %v3274_v33 }
 0x667   :  { %2460 = vmatpush.bf16.msrb.mxu2 %v3282_v37 }
 0x66a   :  { %2382 = vmatpush.bf16.msrb.mxu1 %v3273_v39 }
 0x66b   :  { %2461 = vmatpush.bf16.msrb.mxu2 %v3281_v24 }
 0x66e   :  { %2383 = vmatpush.bf16.msrb.mxu1 %v3272_v32 }
 0x66f   :  { %2462 = vmatpush.bf16.msrb.mxu2 %v3280_v44 }
 0x672   :  { %2384 = vmatpush.bf16.msrb.mxu1 %v3271_v53 }
 0x673   :  { %2463 = vmatpush.bf16.msrb.mxu2 %v3279_v57 }
 0x676   :  { %2385 = vmatpush.bf16.msrb.mxu1 %v3270_v1 }
 0x677   :  { %2464 = vmatpush.bf16.msrb.mxu2 %v3278_v5 }
 0x67a   :  { %2386 = vmatpush.bf16.msrb.mxu1 %v3269_v34 }
 0x67b   :  { %2465 = vmatpush.bf16.msrb.mxu2 %v3277_v45 }
 0x67e   :  { %2387 = vmatpush.bf16.msrb.mxu1 %v3268_v30 }
 0x67f   :  { %2466 = vmatpush.bf16.msrb.mxu2 %v3276_v3 }
 0x6de   :  { %v1781_v4 = vpop.f32.mrf.mxu1 }
 0x6df   :  { %v1785_v51 = vpack.c.bf16 %v1781_v4, %v1781_v4  ;;  %v3260_v4 = vld [vmem:[#allocation11 + $0x180] sm:$0xff] }
 0x6e4   :  { %v1860_v18 = vpop.f32.mrf.mxu2 }
 0x6e5   :  { %v1864_v16 = vpack.c.bf16 %v1860_v18, %v1860_v18  ;;  %v1939_v56 = vpop.f32.mrf.mxu3 }
 0x6e6   :  { %v1943_v38 = vpack.c.bf16 %v1939_v56, %v1939_v56  ;;  %v1783_v41 = vpop.f32.mrf.mxu1 }
 0x6e7   :  { %v1945_v11 = vunpack.c.l.b16 %v1864_v16 }
 0x6e8   :  { %v1957_v49 = vsel %vm1947_vm0, %v1943_v38, 0 }
 0x6e9   :  { %v1946_v59 = vpack.c.b16 %v1945_v11, %v1945_v11  ;;  %1965 = vmatpush.bf16.msra.mxu0 %v1957_v49 }
 0x6eb   :  { %v1950_v60 = vsel %vm1947_vm0, %v1785_v51, %v1946_v59 }
 0x6ec   :  { %v1862_v63 = vpop.f32.mrf.mxu2 }
 0x6ed   :  { %v1941_v0 = vpop.f32.mrf.mxu3  ;;  %1966 = vmatpush.bf16.msra.mxu0 %v1950_v60 }
 0x6f0   :  { %2941 = vmatmul.msk.bf16.vlgmr.msra.gmra.mxu0 %vm1952_vm1, %v4182_v7 }
 0x76d   :  { %v1968_v19 = vpop.f32.mrf.mxu0 }
 0x76e   :  { %v1972_v20 = vmax.f32 %v1968_v19, 0.0 }
 0x770   :  { %v1973_v21 = vpack.c.bf16 %v1972_v20, %v1972_v20 }
 0x772   :  { %2047 = vmatmul.bf16.vlgmr.msra.gmra.mxu1 %v1973_v21  ;;  %2126 = vmatmul.bf16.vlgmr.msra.gmra.mxu2 %v1973_v21 }
 0x773   :  { %2205 = vmatmul.bf16.vlgmr.msra.gmra.mxu3 %v1973_v21 }
 0x775   :  { %v1970_v23 = vpop.f32.mrf.mxu0 }
 0x7ef   :  { %v2048_v52 = vpop.f32.mrf.mxu1 }
 0x7f0   :  { %v2052_v58 = vpack.c.bf16 %v2048_v52, %v2048_v52 }
 0x7f5   :  { %v2127_v12 = vpop.f32.mrf.mxu2 }
 0x7f6   :  { %v2131_v14 = vpack.c.bf16 %v2127_v12, %v2127_v12  ;;  %v2206_v15 = vpop.f32.mrf.mxu3 }
 0x7f7   :  { %v2210_v35 = vpack.c.bf16 %v2206_v15, %v2206_v15  ;;  %v2050_v50 = vpop.f32.mrf.mxu1 }
 0x7f8   :  { %v2212_v43 = vunpack.c.l.b16 %v2131_v14 }
 0x7f9   :  { %v2219_v28 = vsel %vm1947_vm0, %v2210_v35, 0 }
 0x7fa   :  { %v2213_v62 = vpack.c.b16 %v2212_v43, %v2212_v43  ;;  %2227 = vmatpush.bf16.msrb.mxu0 %v2219_v28 }
 0x7fc   :  { %v2216_v55 = vsel %vm1947_vm0, %v2052_v58, %v2213_v62 }
 0x7fd   :  { %v2129_v46 = vpop.f32.mrf.mxu2 }
 0x7fe   :  { %v2208_v6 = vpop.f32.mrf.mxu3  ;;  %2228 = vmatpush.bf16.msrb.mxu0 %v2216_v55 }
 0x801   :  { %3038 = vmatmul.msk.bf16.vlgmr.msrb.gmra.mxu0 %vm1952_vm1, %v4182_v7 }
 0x802   :  { %2301 = vmatpush.bf16.msra.mxu0 %v3267_v27 }
 0x806   :  { %2302 = vmatpush.bf16.msra.mxu0 %v3266_v17 }
 0x80a   :  { %2303 = vmatpush.bf16.msra.mxu0 %v3265_v31 }
 0x80e   :  { %2304 = vmatpush.bf16.msra.mxu0 %v3264_v54 }
 0x812   :  { %2305 = vmatpush.bf16.msra.mxu0 %v3263_v42 }
 0x816   :  { %2306 = vmatpush.bf16.msra.mxu0 %v3262_v25 }
 0x81a   :  { %2307 = vmatpush.bf16.msra.mxu0 %v3261_v10 }
 0x81e   :  { %2308 = vmatpush.bf16.msra.mxu0 %v3260_v4 }
 0x87e   :  { %v2230_v22 = vpop.f32.mrf.mxu0 }
 0x87f   :  { %v2234_v61 = vmax.f32 %v2230_v22, 0.0 }
 0x881   :  { %v2235_v40 = vpack.c.bf16 %v2234_v61, %v2234_v61 }
 0x883   :  { %2309 = vmatmul.bf16.vlgmr.msra.gmra.mxu0 %v2235_v40  ;;  %2388 = vmatmul.bf16.vlgmr.msrb.gmra.mxu1 %v2235_v40 }
 0x884   :  { %2467 = vmatmul.bf16.vlgmr.msrb.gmra.mxu2 %v2235_v40 }
 0x886   :  { %v2232_v2 = vpop.f32.mrf.mxu0 }
 0x900   :  { %v2310_v18 = vpop.f32.mrf.mxu0  ;;  %v2389_v16 = vpop.f32.mrf.mxu1 }
 0x901   :  { %v2393_v56 = vpack.c.bf16 %v2389_v16, %v2389_v16  ;;  %v2314_v51 = vpack.c.bf16 %v2310_v18, %v2310_v18 }
 0x903   :  { %v2474_v38 = vunpack.c.l.b16 %v2393_v56 }
 0x905   :  { %v2475_v36 = vpack.c.b16 %v2474_v38, %v2474_v38 }
 0x907   :  { %v2468_v41 = vpop.f32.mrf.mxu2  ;;  %v2478_v59 = vsel %vm1947_vm0, %v2314_v51, %v2475_v36 }
 0x908   :  { %v2472_v47 = vpack.c.bf16 %v2468_v41, %v2468_v41  ;;  %v2312_v48 = vpop.f32.mrf.mxu0  ;;  %v2391_v11 = vpop.f32.mrf.mxu1 }
 0x90a   :  { %v2481_v49 = vsel %vm1947_vm0, %v2472_v47, 0 }
 0x90b   :  { %2489 = vmatpush.bf16.msrb.mxu3 %v2481_v49 }
 0x90f   :  { %v2470_v60 = vpop.f32.mrf.mxu2  ;;  %2490 = vmatpush.bf16.msrb.mxu3 %v2478_v59 }
 0x912   :  { %3135 = vmatmul.msk.bf16.vlgmr.msrb.gmra.mxu3 %vm1952_vm1, %v4182_v7 }
 0x995   :  { %v2492_v63 = vpop.f32.mrf.mxu3 }
 0x996   :  { %2496 = vst [vmem:[#allocation13] sm:$0xff] %v2492_v63 }
 0x997   :  { %2507 = dma.vmem_to_hbm [thread:$0]  %s2503_s14, 128, %s2505_s17, [#allocation4]  }
 0x99d   :  { %v2494_v0 = vpop.f32.mrf.mxu3 }
 0x99e   :  { %3601 = dma.done.wait [#allocation4], 128  }
 0x99f   :  { %3602 = vsyncadd [#allocation4], 4294967168 }
 0x9a0   :  { %2512 = vsyncpa [#allocation3], 1 }
 0x9a1   :  { %2513 = vsyncpa [#allocation6], 1 }
 0x9a2   :  { %2514 = vsyncpa [#allocation9], 1 }
 0x9a3   :  { %2515 = vsyncpa [#allocation12], 1 }
 0x9a4   :  { %2516 = vsyncpa [#allocation4], 1 }

</bundles_post_ra>
